<compile_context>
chip_gen: v5e
topology: v5e:2x2
jax: 0.10.0
libtpu: 0.0.40
codegen_flags: <defaults>
</compile_context>

<pallas_src>
import math

import numpy as np
import jax
import jax.numpy as jnp
from jax.experimental import pallas as pl
from jax.experimental.pallas import tpu as pltpu


# ------------------------------ fused kernel ---------------------------------

def _make_kernel(offsets, *, n_enc, n_dec, n_heads, dec_seq_len, seq_len,
                 batch, dim_val, dim_attn):
    """Whole-forward fused kernel. `offsets` lists (row_off, rows, cols) of
    every parameter inside the packed slab, in the exact order it is read."""
    B, S, Sd = batch, seq_len, dec_seq_len
    D, A, H = dim_val, dim_attn, n_heads

    def kernel(slab_ref, x_ref, o_ref):
        pos = [0]

        def rd():
            off, r, c = offsets[pos[0]]
            pos[0] += 1
            return slab_ref[off:off + r, :c]          # static, 8-aligned slice

        def layernorm(y, g, b):
            # Two-pass (mean-subtracted) variance, eps=1e-5 (PyTorch default).
            mu = jnp.mean(y, axis=-1, keepdims=True)
            yc = y - mu
            var = jnp.mean(yc * yc, axis=-1, keepdims=True)
            return yc * jax.lax.rsqrt(var + 1e-5) * g + b

        def elu(h):
            # F.elu, alpha=1.0
            return jnp.where(h > 0, h, jnp.exp(jnp.minimum(h, 0.0)) - 1.0)

        def ffn(z, w2t, b2, w1t, b1):                 # fc1(elu(fc2(z)))
            h = jnp.dot(z, w2t, preferred_element_type=jnp.float32) + b2
            h = elu(h)
            return jnp.dot(h, w1t, preferred_element_type=jnp.float32) + b1

        def mha(xq, sq, xkv, skv, wq_t, wk_t, wv_t, wfc_t):
            # Fused head projections: one matmul each for all heads' Q/K/V;
            # the 1/sqrt(dim_attn) softmax scale is pre-folded into wq_t.
            q = jnp.dot(xq, wq_t, preferred_element_type=jnp.float32)   # (B*sq, H*A)
            k = jnp.dot(xkv, wk_t, preferred_element_type=jnp.float32)  # (B*skv, H*A)
            v = jnp.dot(xkv, wv_t, preferred_element_type=jnp.float32)  # (B*skv, H*D)
            outs = []
            for b in range(B):        # only the score/value matmuls are per-b
                qb = q[b * sq:(b + 1) * sq, :]
                kb = k[b * skv:(b + 1) * skv, :]
                vb = v[b * skv:(b + 1) * skv, :]
                acc = None
                for h in range(H):
                    qh = qb[:, h * A:(h + 1) * A]
                    kh = kb[:, h * A:(h + 1) * A]
                    vh = vb[:, h * D:(h + 1) * D]
                    # q @ k.T without materializing the transpose.
                    sc = jax.lax.dot_general(
                        qh, kh, (((1,), (1,)), ((), ())),
                        preferred_element_type=jnp.float32)             # (sq, skv)
                    sc = sc - jnp.max(sc, axis=-1, keepdims=True)
                    p = jnp.exp(sc)
                    p = p / jnp.sum(p, axis=-1, keepdims=True)          # exact softmax
                    ah = jnp.dot(p, vh, preferred_element_type=jnp.float32)
                    # head-concat + output projection folded into wfc blocks
                    ctr = jnp.dot(ah, wfc_t[h * D:(h + 1) * D, :],
                                  preferred_element_type=jnp.float32)
                    acc = ctr if acc is None else acc + ctr
                outs.append(acc)
            return outs[0] if B == 1 else jnp.concatenate(outs, axis=0)

        x2 = x_ref[...]                               # (B*S, F), b-major rows

        pe = rd()                                     # (B*S, D), batch-tiled
        enc_wt, enc_b = rd(), rd()
        dec_wt, dec_b = rd(), rd()

        # -------------------------------- encoder ----------------------------
        e = jnp.dot(x2, enc_wt, preferred_element_type=jnp.float32) + enc_b
        e = e + pe
        for _ in range(n_enc):
            wq, wk, wv, wfc = rd(), rd(), rd(), rd()
            w2t, b2, w1t, b1 = rd(), rd(), rd(), rd()
            n1g, n1b, n2g, n2b = rd(), rd(), rd(), rd()
            a = mha(e, S, e, S, wq, wk, wv, wfc)
            e = layernorm(e + a, n1g, n1b)
            a = ffn(e, w2t, b2, w1t, b1)
            e = layernorm(e + a, n2g, n2b)

        # -------------------------------- decoder ----------------------------
        # Last dec_seq_len timesteps of every batch element (8-aligned slices).
        if B > 1:
            xd = jnp.concatenate(
                [x2[b * S + S - Sd:(b + 1) * S, :] for b in range(B)], axis=0)
        else:
            xd = x2[S - Sd:S, :]
        d = jnp.dot(xd, dec_wt, preferred_element_type=jnp.float32) + dec_b
        for _ in range(n_dec):
            wq1, wk1, wv1, wfc1 = rd(), rd(), rd(), rd()
            wq2, wk2, wv2, wfc2 = rd(), rd(), rd(), rd()
            w2t, b2, w1t, b1 = rd(), rd(), rd(), rd()
            n1g, n1b = rd(), rd()
            n2g, n2b = rd(), rd()
            n3g, n3b = rd(), rd()
            a = mha(d, Sd, d, Sd, wq1, wk1, wv1, wfc1)
            d = layernorm(a + d, n1g, n1b)
            a = mha(d, Sd, e, S, wq2, wk2, wv2, wfc2)     # cross-attn on enc
            d = layernorm(a + d, n2g, n2b)
            a = ffn(d, w2t, b2, w1t, b1)
            d = layernorm(d + a, n3g, n3b)

        # ------------------------------ output head --------------------------
        # out = out_fc(d.flatten(start_dim=1)).  A lane-merging reshape
        # (B*Sd, D) -> (B, Sd*D) is not reliably lowerable by Mosaic, so the
        # flatten @ W is kept as an unrolled accumulation of row matmuls
        # (B*Sd = 16 tiny MXU pushes -- a negligible epilogue at these sizes).
        out_wt, out_b = rd(), rd()                    # (Sd*D, O), (1, O)
        assert pos[0] == len(offsets)                 # trace-time sanity check
        for b in range(B):
            acc = out_b
            for s in range(Sd):
                acc = acc + jnp.dot(
                    d[b * Sd + s:b * Sd + s + 1, :],
                    out_wt[s * D:(s + 1) * D, :],
                    preferred_element_type=jnp.float32)
            o_ref[b:b + 1, :] = acc

    return kernel


# ------------------------- parameter initialization --------------------------
# Parameters are stored in the layout the kernel consumes: pre-transposed
# (in, out) weights, (1, out) bias rows, per-head Q/K/V weights fused into one
# (D, H*A)/(D, H*D) matrix each with the softmax scale folded into Wq, and the
# MHA output projection pre-permuted from torch's interleaved stack+flatten
# layout to the head-concat layout used in-kernel.

def _randn(key, shape, scale=0.1):
    return jax.random.normal(key, shape, jnp.float32) * scale


def init_linear(key, out_dim, in_dim, bias=True):
    k1, k2 = jax.random.split(key)
    W = _randn(k1, (out_dim, in_dim))
    b = _randn(k2, (out_dim,)) if bias else jnp.zeros((out_dim,), jnp.float32)
    return {"Wt": W.T, "b": b.reshape(1, out_dim)}


def init_layernorm(dim):
    return {"g": jnp.ones((1, dim), jnp.float32),
            "b": jnp.zeros((1, dim), jnp.float32)}


def init_mha(key, dim_val, dim_attn, n_heads):
    keys = jax.random.split(key, 3 * n_heads + 1)
    scale = 1.0 / math.sqrt(float(dim_attn))
    wq, wk, wv = [], [], []
    for h in range(n_heads):
        wq.append((_randn(keys[3 * h + 0], (dim_attn, dim_val)) * scale).T)
        wk.append(_randn(keys[3 * h + 1], (dim_attn, dim_val)).T)
        wv.append(_randn(keys[3 * h + 2], (dim_val, dim_val)).T)
    Wfc = _randn(keys[-1], (dim_val, n_heads * dim_val))   # torch (out=D, in=H*D)
    # Permute fc input features from torch's interleaved stack(-1)+flatten
    # layout (d*H + h) to the head-concat layout (h*D + d) used in-kernel.
    idx = jnp.array([dd * n_heads + h
                     for h in range(n_heads) for dd in range(dim_val)],
                    dtype=jnp.int32)
    return {"Wq_t": jnp.concatenate(wq, axis=1),   # (D, H*A), scale folded in
            "Wk_t": jnp.concatenate(wk, axis=1),   # (D, H*A)
            "Wv_t": jnp.concatenate(wv, axis=1),   # (D, H*D)
            "Wfc_t": Wfc[:, idx].T}                # (H*D, D)


def init_encoder_layer(key, dim_val, dim_attn, n_heads):
    k = jax.random.split(key, 3)
    return {"attn": init_mha(k[0], dim_val, dim_attn, n_heads),
            "fc1": init_linear(k[1], dim_val, dim_val),
            "fc2": init_linear(k[2], dim_val, dim_val),
            "norm1": init_layernorm(dim_val),
            "norm2": init_layernorm(dim_val)}


def init_decoder_layer(key, dim_val, dim_attn, n_heads):
    k = jax.random.split(key, 4)
    return {"attn1": init_mha(k[0], dim_val, dim_attn, n_heads),
            "attn2": init_mha(k[1], dim_val, dim_attn, n_heads),
            "fc1": init_linear(k[2], dim_val, dim_val),
            "fc2": init_linear(k[3], dim_val, dim_val),
            "norm1": init_layernorm(dim_val),
            "norm2": init_layernorm(dim_val),
            "norm3": init_layernorm(dim_val)}


def positional_encoding(max_len, d_model):
    position = jnp.arange(max_len, dtype=jnp.float32)[:, None]
    div_term = jnp.exp(jnp.arange(0, d_model, 2, dtype=jnp.float32)
                       * (-math.log(10000.0) / d_model))
    pe = jnp.zeros((max_len, d_model), jnp.float32)
    pe = pe.at[:, 0::2].set(jnp.sin(position * div_term))
    pe = pe.at[:, 1::2].set(jnp.cos(position * div_term))
    return pe


def init_transformer(key, dim_val, dim_attn, input_size, dec_seq_len,
                     out_seq_len, n_decoder_layers=1, n_encoder_layers=1,
                     n_heads=1, max_len=5000):
    keys = jax.random.split(key, n_encoder_layers + n_decoder_layers + 3)
    encs = [init_encoder_layer(keys[i], dim_val, dim_attn, n_heads)
            for i in range(n_encoder_layers)]
    decs = [init_decoder_layer(keys[n_encoder_layers + i], dim_val, dim_attn,
                               n_heads)
            for i in range(n_decoder_layers)]
    return {"encs": encs, "decs": decs,
            "pe": positional_encoding(max_len, dim_val),
            "enc_input_fc": init_linear(keys[-3], dim_val, input_size),
            "dec_input_fc": init_linear(keys[-2], dim_val, input_size),
            "out_fc": init_linear(keys[-1], out_seq_len, dec_seq_len * dim_val),
            "dim_val": dim_val, "dim_attn": dim_attn, "n_heads": n_heads,
            "dec_seq_len": dec_seq_len}


# ------------------------------ slab packing ----------------------------------
# All parameters (and the batch-tiled positional encoding) are packed once into
# a single (rows, 128k)-shaped f32 slab; every entry starts on an 8-row
# boundary so in-kernel reads are tile-aligned static slices.

def pack_params(params, seq_len, batch):
    entries = []

    def add(a):
        a = np.asarray(a, np.float32)
        assert a.ndim == 2
        entries.append(a)

    # Positional encoding tiled across batch so it adds directly to the
    # batch-folded (B*S, D) rows (also avoids windowing the (5000, D) buffer).
    add(np.tile(np.asarray(params["pe"][:seq_len]), (batch, 1)))
    add(params["enc_input_fc"]["Wt"]); add(params["enc_input_fc"]["b"])
    add(params["dec_input_fc"]["Wt"]); add(params["dec_input_fc"]["b"])
    for lw in params["encs"]:
        at = lw["attn"]
        add(at["Wq_t"]); add(at["Wk_t"]); add(at["Wv_t"]); add(at["Wfc_t"])
        add(lw["fc2"]["Wt"]); add(lw["fc2"]["b"])
        add(lw["fc1"]["Wt"]); add(lw["fc1"]["b"])
        add(lw["norm1"]["g"]); add(lw["norm1"]["b"])
        add(lw["norm2"]["g"]); add(lw["norm2"]["b"])
    for lw in params["decs"]:
        for name in ("attn1", "attn2"):
            at = lw[name]
            add(at["Wq_t"]); add(at["Wk_t"]); add(at["Wv_t"]); add(at["Wfc_t"])
        add(lw["fc2"]["Wt"]); add(lw["fc2"]["b"])
        add(lw["fc1"]["Wt"]); add(lw["fc1"]["b"])
        add(lw["norm1"]["g"]); add(lw["norm1"]["b"])
        add(lw["norm2"]["g"]); add(lw["norm2"]["b"])
        add(lw["norm3"]["g"]); add(lw["norm3"]["b"])
    add(params["out_fc"]["Wt"]); add(params["out_fc"]["b"])

    lanes = max(128, ((max(a.shape[1] for a in entries) + 127) // 128) * 128)
    offsets, rows = [], 0
    for a in entries:
        r, c = a.shape
        offsets.append((rows, int(r), int(c)))
        rows += ((r + 7) // 8) * 8            # 8-row (sublane tile) alignment
    slab = np.zeros((rows, lanes), np.float32)
    for (off, r, c), a in zip(offsets, entries):
        slab[off:off + r, :c] = a
    return jnp.asarray(slab), tuple(offsets)


# ------------------------------ forward pass ----------------------------------

def transformer_forward(params, slab, offsets, x):
    B, S, F = x.shape
    out_seq_len = int(params["out_fc"]["Wt"].shape[1])
    kernel = _make_kernel(
        offsets,
        n_enc=len(params["encs"]), n_dec=len(params["decs"]),
        n_heads=params["n_heads"], dec_seq_len=params["dec_seq_len"],
        seq_len=S, batch=B,
        dim_val=params["dim_val"], dim_attn=params["dim_attn"])
    # Row-major collapse of the batch outside the kernel: no data movement.
    x2 = x.reshape(B * S, F)
    # Single invocation: the packed weight slab, the whole batch and the output
    # live in VMEM for the full forward pass (2 input DMAs + 1 output store).
    return pl.pallas_call(
        kernel,
        out_shape=jax.ShapeDtypeStruct((B, out_seq_len), jnp.float32),
        compiler_params=pltpu.CompilerParams(
            vmem_limit_bytes=32 * 1024 * 1024),
    )(slab, x2)


# ---------------------------------- main ---------------------------------------

if __name__ == "__main__":
    dim_val = 32
    dim_attn = 16
    input_size = 4
    seq_len = 16
    dec_seq_len = 8
    out_seq_len = 4
    batch = 2
    n_heads = 1
    n_encoder_layers = 1
    n_decoder_layers = 1

    key = jax.random.PRNGKey(0)
    kp, kx = jax.random.split(key)

    params = init_transformer(
        kp, dim_val, dim_attn, input_size, dec_seq_len, out_seq_len,
        n_decoder_layers=n_decoder_layers, n_encoder_layers=n_encoder_layers,
        n_heads=n_heads,
    )
    x = jax.random.normal(kx, (batch, seq_len, input_size), jnp.float32)

    slab, offsets = pack_params(params, seq_len, batch)

    out = transformer_forward(params, slab, offsets, x)
    out = jax.block_until_ready(out)
    assert out.shape == (batch, out_seq_len), out.shape
    assert bool(jnp.all(jnp.isfinite(out)))
    print("KERNEL_OK")
</pallas_src>

<mosaic_0001>
module attributes {stable_mosaic.version = 11 : i64} {
  func.func @kernel(%arg0: memref<952x128xf32, #tpu.memory_space<vmem>>, %arg1: memref<32x4xf32, #tpu.memory_space<vmem>>, %arg2: memref<2x4xf32, #tpu.memory_space<vmem>>) attributes {dimension_semantics = [], scalar_prefetch = 0 : i64, scratch_operands = 0 : i64, tpu.core_type = #tpu.core_type<tc>} {
    %c0 = arith.constant 0 : index
    %c0_0 = arith.constant 0 : index
    %0 = vector.load %arg1[%c0, %c0_0] : memref<32x4xf32, #tpu.memory_space<vmem>>, vector<32x4xf32>
    %c0_1 = arith.constant 0 : index
    %c0_2 = arith.constant 0 : index
    %1 = vector.load %arg0[%c0_1, %c0_2] : memref<952x128xf32, #tpu.memory_space<vmem>>, vector<32x32xf32>
    %c32 = arith.constant 32 : index
    %c0_3 = arith.constant 0 : index
    %2 = vector.load %arg0[%c32, %c0_3] : memref<952x128xf32, #tpu.memory_space<vmem>>, vector<4x32xf32>
    %c40 = arith.constant 40 : index
    %c0_4 = arith.constant 0 : index
    %3 = vector.load %arg0[%c40, %c0_4] : memref<952x128xf32, #tpu.memory_space<vmem>>, vector<1x32xf32>
    %c48 = arith.constant 48 : index
    %c0_5 = arith.constant 0 : index
    %4 = vector.load %arg0[%c48, %c0_5] : memref<952x128xf32, #tpu.memory_space<vmem>>, vector<4x32xf32>
    %c56 = arith.constant 56 : index
    %c0_6 = arith.constant 0 : index
    %5 = vector.load %arg0[%c56, %c0_6] : memref<952x128xf32, #tpu.memory_space<vmem>>, vector<1x32xf32>
    %cst = arith.constant dense<0.000000e+00> : vector<32x32xf32>
    %6 = tpu.matmul %0, %2, %cst {dimension_numbers = #tpu.dot_dimension_numbers<[1], [0], [0], [1], [0, 0, 1, 1], [], []>} : vector<32x4xf32>, vector<4x32xf32>, vector<32x32xf32> -> vector<32x32xf32>
    %7 = vector.broadcast %3 : vector<1x32xf32> to vector<32x32xf32>
    %8 = arith.addf %6, %7 : vector<32x32xf32>
    %9 = arith.addf %8, %1 : vector<32x32xf32>
    %c64 = arith.constant 64 : index
    %c0_7 = arith.constant 0 : index
    %10 = vector.load %arg0[%c64, %c0_7] : memref<952x128xf32, #tpu.memory_space<vmem>>, vector<32x16xf32>
    %c96 = arith.constant 96 : index
    %c0_8 = arith.constant 0 : index
    %11 = vector.load %arg0[%c96, %c0_8] : memref<952x128xf32, #tpu.memory_space<vmem>>, vector<32x16xf32>
    %c128 = arith.constant 128 : index
    %c0_9 = arith.constant 0 : index
    %12 = vector.load %arg0[%c128, %c0_9] : memref<952x128xf32, #tpu.memory_space<vmem>>, vector<32x32xf32>
    %c160 = arith.constant 160 : index
    %c0_10 = arith.constant 0 : index
    %13 = vector.load %arg0[%c160, %c0_10] : memref<952x128xf32, #tpu.memory_space<vmem>>, vector<32x32xf32>
    %c192 = arith.constant 192 : index
    %c0_11 = arith.constant 0 : index
    %14 = vector.load %arg0[%c192, %c0_11] : memref<952x128xf32, #tpu.memory_space<vmem>>, vector<32x32xf32>
    %c224 = arith.constant 224 : index
    %c0_12 = arith.constant 0 : index
    %15 = vector.load %arg0[%c224, %c0_12] : memref<952x128xf32, #tpu.memory_space<vmem>>, vector<1x32xf32>
    %c232 = arith.constant 232 : index
    %c0_13 = arith.constant 0 : index
    %16 = vector.load %arg0[%c232, %c0_13] : memref<952x128xf32, #tpu.memory_space<vmem>>, vector<32x32xf32>
    %c264 = arith.constant 264 : index
    %c0_14 = arith.constant 0 : index
    %17 = vector.load %arg0[%c264, %c0_14] : memref<952x128xf32, #tpu.memory_space<vmem>>, vector<1x32xf32>
    %c272 = arith.constant 272 : index
    %c0_15 = arith.constant 0 : index
    %18 = vector.load %arg0[%c272, %c0_15] : memref<952x128xf32, #tpu.memory_space<vmem>>, vector<1x32xf32>
    %c280 = arith.constant 280 : index
    %c0_16 = arith.constant 0 : index
    %19 = vector.load %arg0[%c280, %c0_16] : memref<952x128xf32, #tpu.memory_space<vmem>>, vector<1x32xf32>
    %c288 = arith.constant 288 : index
    %c0_17 = arith.constant 0 : index
    %20 = vector.load %arg0[%c288, %c0_17] : memref<952x128xf32, #tpu.memory_space<vmem>>, vector<1x32xf32>
    %c296 = arith.constant 296 : index
    %c0_18 = arith.constant 0 : index
    %21 = vector.load %arg0[%c296, %c0_18] : memref<952x128xf32, #tpu.memory_space<vmem>>, vector<1x32xf32>
    %cst_19 = arith.constant dense<0.000000e+00> : vector<32x16xf32>
    %22 = tpu.matmul %9, %10, %cst_19 {dimension_numbers = #tpu.dot_dimension_numbers<[1], [0], [0], [1], [0, 0, 1, 1], [], []>} : vector<32x32xf32>, vector<32x16xf32>, vector<32x16xf32> -> vector<32x16xf32>
    %cst_20 = arith.constant dense<0.000000e+00> : vector<32x16xf32>
    %23 = tpu.matmul %9, %11, %cst_20 {dimension_numbers = #tpu.dot_dimension_numbers<[1], [0], [0], [1], [0, 0, 1, 1], [], []>} : vector<32x32xf32>, vector<32x16xf32>, vector<32x16xf32> -> vector<32x16xf32>
    %cst_21 = arith.constant dense<0.000000e+00> : vector<32x32xf32>
    %24 = tpu.matmul %9, %12, %cst_21 {dimension_numbers = #tpu.dot_dimension_numbers<[1], [0], [0], [1], [0, 0, 1, 1], [], []>} : vector<32x32xf32>, vector<32x32xf32>, vector<32x32xf32> -> vector<32x32xf32>
    %25 = vector.extract_strided_slice %22 {offsets = [0, 0], sizes = [16, 16], strides = [1, 1]} : vector<32x16xf32> to vector<16x16xf32>
    %26 = vector.extract_strided_slice %23 {offsets = [0, 0], sizes = [16, 16], strides = [1, 1]} : vector<32x16xf32> to vector<16x16xf32>
    %27 = vector.extract_strided_slice %24 {offsets = [0, 0], sizes = [16, 32], strides = [1, 1]} : vector<32x32xf32> to vector<16x32xf32>
    %cst_22 = arith.constant dense<0.000000e+00> : vector<16x16xf32>
    %28 = tpu.matmul %25, %26, %cst_22 {dimension_numbers = #tpu.dot_dimension_numbers<[1], [1], [0], [0], [0, 0, 1, 0], [], []>} : vector<16x16xf32>, vector<16x16xf32>, vector<16x16xf32> -> vector<16x16xf32>
    %cst_23 = arith.constant dense<0xFF800000> : vector<16xf32>
    %29 = vector.multi_reduction <maximumf>, %28, %cst_23 [1] : vector<16x16xf32> to vector<16xf32>
    %30 = vector.shape_cast %29 : vector<16xf32> to vector<16x1xf32>
    %31 = vector.broadcast %30 : vector<16x1xf32> to vector<16x16xf32>
    %32 = arith.subf %28, %31 : vector<16x16xf32>
    %33 = math.exp %32 : vector<16x16xf32>
    %cst_24 = arith.constant dense<0.000000e+00> : vector<16xf32>
    %34 = vector.multi_reduction <add>, %33, %cst_24 [1] : vector<16x16xf32> to vector<16xf32>
    %35 = vector.shape_cast %34 : vector<16xf32> to vector<16x1xf32>
    %36 = vector.broadcast %35 : vector<16x1xf32> to vector<16x16xf32>
    %37 = arith.divf %33, %36 : vector<16x16xf32>
    %cst_25 = arith.constant dense<0.000000e+00> : vector<16x32xf32>
    %38 = tpu.matmul %37, %27, %cst_25 {dimension_numbers = #tpu.dot_dimension_numbers<[1], [0], [0], [1], [0, 0, 1, 1], [], []>} : vector<16x16xf32>, vector<16x32xf32>, vector<16x32xf32> -> vector<16x32xf32>
    %cst_26 = arith.constant dense<0.000000e+00> : vector<16x32xf32>
    %39 = tpu.matmul %38, %13, %cst_26 {dimension_numbers = #tpu.dot_dimension_numbers<[1], [0], [0], [1], [0, 0, 1, 1], [], []>} : vector<16x32xf32>, vector<32x32xf32>, vector<16x32xf32> -> vector<16x32xf32>
    %40 = vector.extract_strided_slice %22 {offsets = [16, 0], sizes = [16, 16], strides = [1, 1]} : vector<32x16xf32> to vector<16x16xf32>
    %41 = vector.extract_strided_slice %23 {offsets = [16, 0], sizes = [16, 16], strides = [1, 1]} : vector<32x16xf32> to vector<16x16xf32>
    %42 = vector.extract_strided_slice %24 {offsets = [16, 0], sizes = [16, 32], strides = [1, 1]} : vector<32x32xf32> to vector<16x32xf32>
    %cst_27 = arith.constant dense<0.000000e+00> : vector<16x16xf32>
    %43 = tpu.matmul %40, %41, %cst_27 {dimension_numbers = #tpu.dot_dimension_numbers<[1], [1], [0], [0], [0, 0, 1, 0], [], []>} : vector<16x16xf32>, vector<16x16xf32>, vector<16x16xf32> -> vector<16x16xf32>
    %cst_28 = arith.constant dense<0xFF800000> : vector<16xf32>
    %44 = vector.multi_reduction <maximumf>, %43, %cst_28 [1] : vector<16x16xf32> to vector<16xf32>
    %45 = vector.shape_cast %44 : vector<16xf32> to vector<16x1xf32>
    %46 = vector.broadcast %45 : vector<16x1xf32> to vector<16x16xf32>
    %47 = arith.subf %43, %46 : vector<16x16xf32>
    %48 = math.exp %47 : vector<16x16xf32>
    %cst_29 = arith.constant dense<0.000000e+00> : vector<16xf32>
    %49 = vector.multi_reduction <add>, %48, %cst_29 [1] : vector<16x16xf32> to vector<16xf32>
    %50 = vector.shape_cast %49 : vector<16xf32> to vector<16x1xf32>
    %51 = vector.broadcast %50 : vector<16x1xf32> to vector<16x16xf32>
    %52 = arith.divf %48, %51 : vector<16x16xf32>
    %cst_30 = arith.constant dense<0.000000e+00> : vector<16x32xf32>
    %53 = tpu.matmul %52, %42, %cst_30 {dimension_numbers = #tpu.dot_dimension_numbers<[1], [0], [0], [1], [0, 0, 1, 1], [], []>} : vector<16x16xf32>, vector<16x32xf32>, vector<16x32xf32> -> vector<16x32xf32>
    %cst_31 = arith.constant dense<0.000000e+00> : vector<16x32xf32>
    %54 = tpu.matmul %53, %13, %cst_31 {dimension_numbers = #tpu.dot_dimension_numbers<[1], [0], [0], [1], [0, 0, 1, 1], [], []>} : vector<16x32xf32>, vector<32x32xf32>, vector<16x32xf32> -> vector<16x32xf32>
    %55 = tpu.concatenate %39, %54 in 0 : vector<16x32xf32>, vector<16x32xf32> -> vector<32x32xf32>
    %56 = arith.addf %9, %55 : vector<32x32xf32>
    %cst_32 = arith.constant dense<0.000000e+00> : vector<32xf32>
    %57 = vector.multi_reduction <add>, %56, %cst_32 [1] : vector<32x32xf32> to vector<32xf32>
    %58 = vector.shape_cast %57 : vector<32xf32> to vector<32x1xf32>
    %cst_33 = arith.constant 3.200000e+01 : f32
    %59 = vector.broadcast %cst_33 : f32 to vector<32x1xf32>
    %60 = arith.divf %58, %59 : vector<32x1xf32>
    %61 = vector.broadcast %60 : vector<32x1xf32> to vector<32x32xf32>
    %62 = arith.subf %56, %61 : vector<32x32xf32>
    %63 = arith.mulf %62, %62 : vector<32x32xf32>
    %cst_34 = arith.constant dense<0.000000e+00> : vector<32xf32>
    %64 = vector.multi_reduction <add>, %63, %cst_34 [1] : vector<32x32xf32> to vector<32xf32>
    %65 = vector.shape_cast %64 : vector<32xf32> to vector<32x1xf32>
    %cst_35 = arith.constant 3.200000e+01 : f32
    %66 = vector.broadcast %cst_35 : f32 to vector<32x1xf32>
    %67 = arith.divf %65, %66 : vector<32x1xf32>
    %cst_36 = arith.constant 9.99999974E-6 : f32
    %68 = vector.broadcast %cst_36 : f32 to vector<32x1xf32>
    %69 = arith.addf %67, %68 : vector<32x1xf32>
    %70 = math.rsqrt %69 : vector<32x1xf32>
    %71 = vector.broadcast %70 : vector<32x1xf32> to vector<32x32xf32>
    %72 = arith.mulf %62, %71 : vector<32x32xf32>
    %73 = vector.broadcast %18 : vector<1x32xf32> to vector<32x32xf32>
    %74 = arith.mulf %72, %73 : vector<32x32xf32>
    %75 = vector.broadcast %19 : vector<1x32xf32> to vector<32x32xf32>
    %76 = arith.addf %74, %75 : vector<32x32xf32>
    %cst_37 = arith.constant dense<0.000000e+00> : vector<32x32xf32>
    %77 = tpu.matmul %76, %14, %cst_37 {dimension_numbers = #tpu.dot_dimension_numbers<[1], [0], [0], [1], [0, 0, 1, 1], [], []>} : vector<32x32xf32>, vector<32x32xf32>, vector<32x32xf32> -> vector<32x32xf32>
    %78 = vector.broadcast %15 : vector<1x32xf32> to vector<32x32xf32>
    %79 = arith.addf %77, %78 : vector<32x32xf32>
    %cst_38 = arith.constant 0.000000e+00 : f32
    %80 = vector.broadcast %cst_38 : f32 to vector<32x32xf32>
    %81 = arith.cmpf ogt, %79, %80 : vector<32x32xf32>
    %cst_39 = arith.constant 0.000000e+00 : f32
    %82 = vector.broadcast %cst_39 : f32 to vector<32x32xf32>
    %83 = arith.minimumf %79, %82 : vector<32x32xf32>
    %84 = math.exp %83 : vector<32x32xf32>
    %cst_40 = arith.constant 1.000000e+00 : f32
    %85 = vector.broadcast %cst_40 : f32 to vector<32x32xf32>
    %86 = arith.subf %84, %85 : vector<32x32xf32>
    %87 = arith.select %81, %79, %86 : vector<32x32xi1>, vector<32x32xf32>
    %cst_41 = arith.constant dense<0.000000e+00> : vector<32x32xf32>
    %88 = tpu.matmul %87, %16, %cst_41 {dimension_numbers = #tpu.dot_dimension_numbers<[1], [0], [0], [1], [0, 0, 1, 1], [], []>} : vector<32x32xf32>, vector<32x32xf32>, vector<32x32xf32> -> vector<32x32xf32>
    %89 = vector.broadcast %17 : vector<1x32xf32> to vector<32x32xf32>
    %90 = arith.addf %88, %89 : vector<32x32xf32>
    %91 = arith.addf %76, %90 : vector<32x32xf32>
    %cst_42 = arith.constant dense<0.000000e+00> : vector<32xf32>
    %92 = vector.multi_reduction <add>, %91, %cst_42 [1] : vector<32x32xf32> to vector<32xf32>
    %93 = vector.shape_cast %92 : vector<32xf32> to vector<32x1xf32>
    %cst_43 = arith.constant 3.200000e+01 : f32
    %94 = vector.broadcast %cst_43 : f32 to vector<32x1xf32>
    %95 = arith.divf %93, %94 : vector<32x1xf32>
    %96 = vector.broadcast %95 : vector<32x1xf32> to vector<32x32xf32>
    %97 = arith.subf %91, %96 : vector<32x32xf32>
    %98 = arith.mulf %97, %97 : vector<32x32xf32>
    %cst_44 = arith.constant dense<0.000000e+00> : vector<32xf32>
    %99 = vector.multi_reduction <add>, %98, %cst_44 [1] : vector<32x32xf32> to vector<32xf32>
    %100 = vector.shape_cast %99 : vector<32xf32> to vector<32x1xf32>
    %cst_45 = arith.constant 3.200000e+01 : f32
    %101 = vector.broadcast %cst_45 : f32 to vector<32x1xf32>
    %102 = arith.divf %100, %101 : vector<32x1xf32>
    %cst_46 = arith.constant 9.99999974E-6 : f32
    %103 = vector.broadcast %cst_46 : f32 to vector<32x1xf32>
    %104 = arith.addf %102, %103 : vector<32x1xf32>
    %105 = math.rsqrt %104 : vector<32x1xf32>
    %106 = vector.broadcast %105 : vector<32x1xf32> to vector<32x32xf32>
    %107 = arith.mulf %97, %106 : vector<32x32xf32>
    %108 = vector.broadcast %20 : vector<1x32xf32> to vector<32x32xf32>
    %109 = arith.mulf %107, %108 : vector<32x32xf32>
    %110 = vector.broadcast %21 : vector<1x32xf32> to vector<32x32xf32>
    %111 = arith.addf %109, %110 : vector<32x32xf32>
    %112 = vector.extract_strided_slice %0 {offsets = [8, 0], sizes = [8, 4], strides = [1, 1]} : vector<32x4xf32> to vector<8x4xf32>
    %113 = vector.extract_strided_slice %0 {offsets = [24, 0], sizes = [8, 4], strides = [1, 1]} : vector<32x4xf32> to vector<8x4xf32>
    %114 = tpu.concatenate %112, %113 in 0 : vector<8x4xf32>, vector<8x4xf32> -> vector<16x4xf32>
    %cst_47 = arith.constant dense<0.000000e+00> : vector<16x32xf32>
    %115 = tpu.matmul %114, %4, %cst_47 {dimension_numbers = #tpu.dot_dimension_numbers<[1], [0], [0], [1], [0, 0, 1, 1], [], []>} : vector<16x4xf32>, vector<4x32xf32>, vector<16x32xf32> -> vector<16x32xf32>
    %116 = vector.broadcast %5 : vector<1x32xf32> to vector<16x32xf32>
    %117 = arith.addf %115, %116 : vector<16x32xf32>
    %c304 = arith.constant 304 : index
    %c0_48 = arith.constant 0 : index
    %118 = vector.load %arg0[%c304, %c0_48] : memref<952x128xf32, #tpu.memory_space<vmem>>, vector<32x16xf32>
    %c336 = arith.constant 336 : index
    %c0_49 = arith.constant 0 : index
    %119 = vector.load %arg0[%c336, %c0_49] : memref<952x128xf32, #tpu.memory_space<vmem>>, vector<32x16xf32>
    %c368 = arith.constant 368 : index
    %c0_50 = arith.constant 0 : index
    %120 = vector.load %arg0[%c368, %c0_50] : memref<952x128xf32, #tpu.memory_space<vmem>>, vector<32x32xf32>
    %c400 = arith.constant 400 : index
    %c0_51 = arith.constant 0 : index
    %121 = vector.load %arg0[%c400, %c0_51] : memref<952x128xf32, #tpu.memory_space<vmem>>, vector<32x32xf32>
    %c432 = arith.constant 432 : index
    %c0_52 = arith.constant 0 : index
    %122 = vector.load %arg0[%c432, %c0_52] : memref<952x128xf32, #tpu.memory_space<vmem>>, vector<32x16xf32>
    %c464 = arith.constant 464 : index
    %c0_53 = arith.constant 0 : index
    %123 = vector.load %arg0[%c464, %c0_53] : memref<952x128xf32, #tpu.memory_space<vmem>>, vector<32x16xf32>
    %c496 = arith.constant 496 : index
    %c0_54 = arith.constant 0 : index
    %124 = vector.load %arg0[%c496, %c0_54] : memref<952x128xf32, #tpu.memory_space<vmem>>, vector<32x32xf32>
    %c528 = arith.constant 528 : index
    %c0_55 = arith.constant 0 : index
    %125 = vector.load %arg0[%c528, %c0_55] : memref<952x128xf32, #tpu.memory_space<vmem>>, vector<32x32xf32>
    %c560 = arith.constant 560 : index
    %c0_56 = arith.constant 0 : index
    %126 = vector.load %arg0[%c560, %c0_56] : memref<952x128xf32, #tpu.memory_space<vmem>>, vector<32x32xf32>
    %c592 = arith.constant 592 : index
    %c0_57 = arith.constant 0 : index
    %127 = vector.load %arg0[%c592, %c0_57] : memref<952x128xf32, #tpu.memory_space<vmem>>, vector<1x32xf32>
    %c600 = arith.constant 600 : index
    %c0_58 = arith.constant 0 : index
    %128 = vector.load %arg0[%c600, %c0_58] : memref<952x128xf32, #tpu.memory_space<vmem>>, vector<32x32xf32>
    %c632 = arith.constant 632 : index
    %c0_59 = arith.constant 0 : index
    %129 = vector.load %arg0[%c632, %c0_59] : memref<952x128xf32, #tpu.memory_space<vmem>>, vector<1x32xf32>
    %c640 = arith.constant 640 : index
    %c0_60 = arith.constant 0 : index
    %130 = vector.load %arg0[%c640, %c0_60] : memref<952x128xf32, #tpu.memory_space<vmem>>, vector<1x32xf32>
    %c648 = arith.constant 648 : index
    %c0_61 = arith.constant 0 : index
    %131 = vector.load %arg0[%c648, %c0_61] : memref<952x128xf32, #tpu.memory_space<vmem>>, vector<1x32xf32>
    %c656 = arith.constant 656 : index
    %c0_62 = arith.constant 0 : index
    %132 = vector.load %arg0[%c656, %c0_62] : memref<952x128xf32, #tpu.memory_space<vmem>>, vector<1x32xf32>
    %c664 = arith.constant 664 : index
    %c0_63 = arith.constant 0 : index
    %133 = vector.load %arg0[%c664, %c0_63] : memref<952x128xf32, #tpu.memory_space<vmem>>, vector<1x32xf32>
    %c672 = arith.constant 672 : index
    %c0_64 = arith.constant 0 : index
    %134 = vector.load %arg0[%c672, %c0_64] : memref<952x128xf32, #tpu.memory_space<vmem>>, vector<1x32xf32>
    %c680 = arith.constant 680 : index
    %c0_65 = arith.constant 0 : index
    %135 = vector.load %arg0[%c680, %c0_65] : memref<952x128xf32, #tpu.memory_space<vmem>>, vector<1x32xf32>
    %cst_66 = arith.constant dense<0.000000e+00> : vector<16x16xf32>
    %136 = tpu.matmul %117, %118, %cst_66 {dimension_numbers = #tpu.dot_dimension_numbers<[1], [0], [0], [1], [0, 0, 1, 1], [], []>} : vector<16x32xf32>, vector<32x16xf32>, vector<16x16xf32> -> vector<16x16xf32>
    %cst_67 = arith.constant dense<0.000000e+00> : vector<16x16xf32>
    %137 = tpu.matmul %117, %119, %cst_67 {dimension_numbers = #tpu.dot_dimension_numbers<[1], [0], [0], [1], [0, 0, 1, 1], [], []>} : vector<16x32xf32>, vector<32x16xf32>, vector<16x16xf32> -> vector<16x16xf32>
    %cst_68 = arith.constant dense<0.000000e+00> : vector<16x32xf32>
    %138 = tpu.matmul %117, %120, %cst_68 {dimension_numbers = #tpu.dot_dimension_numbers<[1], [0], [0], [1], [0, 0, 1, 1], [], []>} : vector<16x32xf32>, vector<32x32xf32>, vector<16x32xf32> -> vector<16x32xf32>
    %139 = vector.extract_strided_slice %136 {offsets = [0, 0], sizes = [8, 16], strides = [1, 1]} : vector<16x16xf32> to vector<8x16xf32>
    %140 = vector.extract_strided_slice %137 {offsets = [0, 0], sizes = [8, 16], strides = [1, 1]} : vector<16x16xf32> to vector<8x16xf32>
    %141 = vector.extract_strided_slice %138 {offsets = [0, 0], sizes = [8, 32], strides = [1, 1]} : vector<16x32xf32> to vector<8x32xf32>
    %cst_69 = arith.constant dense<0.000000e+00> : vector<8x8xf32>
    %142 = tpu.matmul %139, %140, %cst_69 {dimension_numbers = #tpu.dot_dimension_numbers<[1], [1], [0], [0], [0, 0, 1, 0], [], []>} : vector<8x16xf32>, vector<8x16xf32>, vector<8x8xf32> -> vector<8x8xf32>
    %cst_70 = arith.constant dense<0xFF800000> : vector<8xf32>
    %143 = vector.multi_reduction <maximumf>, %142, %cst_70 [1] : vector<8x8xf32> to vector<8xf32>
    %144 = vector.shape_cast %143 : vector<8xf32> to vector<8x1xf32>
    %145 = vector.broadcast %144 : vector<8x1xf32> to vector<8x8xf32>
    %146 = arith.subf %142, %145 : vector<8x8xf32>
    %147 = math.exp %146 : vector<8x8xf32>
    %cst_71 = arith.constant dense<0.000000e+00> : vector<8xf32>
    %148 = vector.multi_reduction <add>, %147, %cst_71 [1] : vector<8x8xf32> to vector<8xf32>
    %149 = vector.shape_cast %148 : vector<8xf32> to vector<8x1xf32>
    %150 = vector.broadcast %149 : vector<8x1xf32> to vector<8x8xf32>
    %151 = arith.divf %147, %150 : vector<8x8xf32>
    %cst_72 = arith.constant dense<0.000000e+00> : vector<8x32xf32>
    %152 = tpu.matmul %151, %141, %cst_72 {dimension_numbers = #tpu.dot_dimension_numbers<[1], [0], [0], [1], [0, 0, 1, 1], [], []>} : vector<8x8xf32>, vector<8x32xf32>, vector<8x32xf32> -> vector<8x32xf32>
    %cst_73 = arith.constant dense<0.000000e+00> : vector<8x32xf32>
    %153 = tpu.matmul %152, %121, %cst_73 {dimension_numbers = #tpu.dot_dimension_numbers<[1], [0], [0], [1], [0, 0, 1, 1], [], []>} : vector<8x32xf32>, vector<32x32xf32>, vector<8x32xf32> -> vector<8x32xf32>
    %154 = vector.extract_strided_slice %136 {offsets = [8, 0], sizes = [8, 16], strides = [1, 1]} : vector<16x16xf32> to vector<8x16xf32>
    %155 = vector.extract_strided_slice %137 {offsets = [8, 0], sizes = [8, 16], strides = [1, 1]} : vector<16x16xf32> to vector<8x16xf32>
    %156 = vector.extract_strided_slice %138 {offsets = [8, 0], sizes = [8, 32], strides = [1, 1]} : vector<16x32xf32> to vector<8x32xf32>
    %cst_74 = arith.constant dense<0.000000e+00> : vector<8x8xf32>
    %157 = tpu.matmul %154, %155, %cst_74 {dimension_numbers = #tpu.dot_dimension_numbers<[1], [1], [0], [0], [0, 0, 1, 0], [], []>} : vector<8x16xf32>, vector<8x16xf32>, vector<8x8xf32> -> vector<8x8xf32>
    %cst_75 = arith.constant dense<0xFF800000> : vector<8xf32>
    %158 = vector.multi_reduction <maximumf>, %157, %cst_75 [1] : vector<8x8xf32> to vector<8xf32>
    %159 = vector.shape_cast %158 : vector<8xf32> to vector<8x1xf32>
    %160 = vector.broadcast %159 : vector<8x1xf32> to vector<8x8xf32>
    %161 = arith.subf %157, %160 : vector<8x8xf32>
    %162 = math.exp %161 : vector<8x8xf32>
    %cst_76 = arith.constant dense<0.000000e+00> : vector<8xf32>
    %163 = vector.multi_reduction <add>, %162, %cst_76 [1] : vector<8x8xf32> to vector<8xf32>
    %164 = vector.shape_cast %163 : vector<8xf32> to vector<8x1xf32>
    %165 = vector.broadcast %164 : vector<8x1xf32> to vector<8x8xf32>
    %166 = arith.divf %162, %165 : vector<8x8xf32>
    %cst_77 = arith.constant dense<0.000000e+00> : vector<8x32xf32>
    %167 = tpu.matmul %166, %156, %cst_77 {dimension_numbers = #tpu.dot_dimension_numbers<[1], [0], [0], [1], [0, 0, 1, 1], [], []>} : vector<8x8xf32>, vector<8x32xf32>, vector<8x32xf32> -> vector<8x32xf32>
    %cst_78 = arith.constant dense<0.000000e+00> : vector<8x32xf32>
    %168 = tpu.matmul %167, %121, %cst_78 {dimension_numbers = #tpu.dot_dimension_numbers<[1], [0], [0], [1], [0, 0, 1, 1], [], []>} : vector<8x32xf32>, vector<32x32xf32>, vector<8x32xf32> -> vector<8x32xf32>
    %169 = tpu.concatenate %153, %168 in 0 : vector<8x32xf32>, vector<8x32xf32> -> vector<16x32xf32>
    %170 = arith.addf %169, %117 : vector<16x32xf32>
    %cst_79 = arith.constant dense<0.000000e+00> : vector<16xf32>
    %171 = vector.multi_reduction <add>, %170, %cst_79 [1] : vector<16x32xf32> to vector<16xf32>
    %172 = vector.shape_cast %171 : vector<16xf32> to vector<16x1xf32>
    %cst_80 = arith.constant 3.200000e+01 : f32
    %173 = vector.broadcast %cst_80 : f32 to vector<16x1xf32>
    %174 = arith.divf %172, %173 : vector<16x1xf32>
    %175 = vector.broadcast %174 : vector<16x1xf32> to vector<16x32xf32>
    %176 = arith.subf %170, %175 : vector<16x32xf32>
    %177 = arith.mulf %176, %176 : vector<16x32xf32>
    %cst_81 = arith.constant dense<0.000000e+00> : vector<16xf32>
    %178 = vector.multi_reduction <add>, %177, %cst_81 [1] : vector<16x32xf32> to vector<16xf32>
    %179 = vector.shape_cast %178 : vector<16xf32> to vector<16x1xf32>
    %cst_82 = arith.constant 3.200000e+01 : f32
    %180 = vector.broadcast %cst_82 : f32 to vector<16x1xf32>
    %181 = arith.divf %179, %180 : vector<16x1xf32>
    %cst_83 = arith.constant 9.99999974E-6 : f32
    %182 = vector.broadcast %cst_83 : f32 to vector<16x1xf32>
    %183 = arith.addf %181, %182 : vector<16x1xf32>
    %184 = math.rsqrt %183 : vector<16x1xf32>
    %185 = vector.broadcast %184 : vector<16x1xf32> to vector<16x32xf32>
    %186 = arith.mulf %176, %185 : vector<16x32xf32>
    %187 = vector.broadcast %130 : vector<1x32xf32> to vector<16x32xf32>
    %188 = arith.mulf %186, %187 : vector<16x32xf32>
    %189 = vector.broadcast %131 : vector<1x32xf32> to vector<16x32xf32>
    %190 = arith.addf %188, %189 : vector<16x32xf32>
    %cst_84 = arith.constant dense<0.000000e+00> : vector<16x16xf32>
    %191 = tpu.matmul %190, %122, %cst_84 {dimension_numbers = #tpu.dot_dimension_numbers<[1], [0], [0], [1], [0, 0, 1, 1], [], []>} : vector<16x32xf32>, vector<32x16xf32>, vector<16x16xf32> -> vector<16x16xf32>
    %cst_85 = arith.constant dense<0.000000e+00> : vector<32x16xf32>
    %192 = tpu.matmul %111, %123, %cst_85 {dimension_numbers = #tpu.dot_dimension_numbers<[1], [0], [0], [1], [0, 0, 1, 1], [], []>} : vector<32x32xf32>, vector<32x16xf32>, vector<32x16xf32> -> vector<32x16xf32>
    %cst_86 = arith.constant dense<0.000000e+00> : vector<32x32xf32>
    %193 = tpu.matmul %111, %124, %cst_86 {dimension_numbers = #tpu.dot_dimension_numbers<[1], [0], [0], [1], [0, 0, 1, 1], [], []>} : vector<32x32xf32>, vector<32x32xf32>, vector<32x32xf32> -> vector<32x32xf32>
    %194 = vector.extract_strided_slice %191 {offsets = [0, 0], sizes = [8, 16], strides = [1, 1]} : vector<16x16xf32> to vector<8x16xf32>
    %195 = vector.extract_strided_slice %192 {offsets = [0, 0], sizes = [16, 16], strides = [1, 1]} : vector<32x16xf32> to vector<16x16xf32>
    %196 = vector.extract_strided_slice %193 {offsets = [0, 0], sizes = [16, 32], strides = [1, 1]} : vector<32x32xf32> to vector<16x32xf32>
    %cst_87 = arith.constant dense<0.000000e+00> : vector<8x16xf32>
    %197 = tpu.matmul %194, %195, %cst_87 {dimension_numbers = #tpu.dot_dimension_numbers<[1], [1], [0], [0], [0, 0, 1, 0], [], []>} : vector<8x16xf32>, vector<16x16xf32>, vector<8x16xf32> -> vector<8x16xf32>
    %cst_88 = arith.constant dense<0xFF800000> : vector<8xf32>
    %198 = vector.multi_reduction <maximumf>, %197, %cst_88 [1] : vector<8x16xf32> to vector<8xf32>
    %199 = vector.shape_cast %198 : vector<8xf32> to vector<8x1xf32>
    %200 = vector.broadcast %199 : vector<8x1xf32> to vector<8x16xf32>
    %201 = arith.subf %197, %200 : vector<8x16xf32>
    %202 = math.exp %201 : vector<8x16xf32>
    %cst_89 = arith.constant dense<0.000000e+00> : vector<8xf32>
    %203 = vector.multi_reduction <add>, %202, %cst_89 [1] : vector<8x16xf32> to vector<8xf32>
    %204 = vector.shape_cast %203 : vector<8xf32> to vector<8x1xf32>
    %205 = vector.broadcast %204 : vector<8x1xf32> to vector<8x16xf32>
    %206 = arith.divf %202, %205 : vector<8x16xf32>
    %cst_90 = arith.constant dense<0.000000e+00> : vector<8x32xf32>
    %207 = tpu.matmul %206, %196, %cst_90 {dimension_numbers = #tpu.dot_dimension_numbers<[1], [0], [0], [1], [0, 0, 1, 1], [], []>} : vector<8x16xf32>, vector<16x32xf32>, vector<8x32xf32> -> vector<8x32xf32>
    %cst_91 = arith.constant dense<0.000000e+00> : vector<8x32xf32>
    %208 = tpu.matmul %207, %125, %cst_91 {dimension_numbers = #tpu.dot_dimension_numbers<[1], [0], [0], [1], [0, 0, 1, 1], [], []>} : vector<8x32xf32>, vector<32x32xf32>, vector<8x32xf32> -> vector<8x32xf32>
    %209 = vector.extract_strided_slice %191 {offsets = [8, 0], sizes = [8, 16], strides = [1, 1]} : vector<16x16xf32> to vector<8x16xf32>
    %210 = vector.extract_strided_slice %192 {offsets = [16, 0], sizes = [16, 16], strides = [1, 1]} : vector<32x16xf32> to vector<16x16xf32>
    %211 = vector.extract_strided_slice %193 {offsets = [16, 0], sizes = [16, 32], strides = [1, 1]} : vector<32x32xf32> to vector<16x32xf32>
    %cst_92 = arith.constant dense<0.000000e+00> : vector<8x16xf32>
    %212 = tpu.matmul %209, %210, %cst_92 {dimension_numbers = #tpu.dot_dimension_numbers<[1], [1], [0], [0], [0, 0, 1, 0], [], []>} : vector<8x16xf32>, vector<16x16xf32>, vector<8x16xf32> -> vector<8x16xf32>
    %cst_93 = arith.constant dense<0xFF800000> : vector<8xf32>
    %213 = vector.multi_reduction <maximumf>, %212, %cst_93 [1] : vector<8x16xf32> to vector<8xf32>
    %214 = vector.shape_cast %213 : vector<8xf32> to vector<8x1xf32>
    %215 = vector.broadcast %214 : vector<8x1xf32> to vector<8x16xf32>
    %216 = arith.subf %212, %215 : vector<8x16xf32>
    %217 = math.exp %216 : vector<8x16xf32>
    %cst_94 = arith.constant dense<0.000000e+00> : vector<8xf32>
    %218 = vector.multi_reduction <add>, %217, %cst_94 [1] : vector<8x16xf32> to vector<8xf32>
    %219 = vector.shape_cast %218 : vector<8xf32> to vector<8x1xf32>
    %220 = vector.broadcast %219 : vector<8x1xf32> to vector<8x16xf32>
    %221 = arith.divf %217, %220 : vector<8x16xf32>
    %cst_95 = arith.constant dense<0.000000e+00> : vector<8x32xf32>
    %222 = tpu.matmul %221, %211, %cst_95 {dimension_numbers = #tpu.dot_dimension_numbers<[1], [0], [0], [1], [0, 0, 1, 1], [], []>} : vector<8x16xf32>, vector<16x32xf32>, vector<8x32xf32> -> vector<8x32xf32>
    %cst_96 = arith.constant dense<0.000000e+00> : vector<8x32xf32>
    %223 = tpu.matmul %222, %125, %cst_96 {dimension_numbers = #tpu.dot_dimension_numbers<[1], [0], [0], [1], [0, 0, 1, 1], [], []>} : vector<8x32xf32>, vector<32x32xf32>, vector<8x32xf32> -> vector<8x32xf32>
    %224 = tpu.concatenate %208, %223 in 0 : vector<8x32xf32>, vector<8x32xf32> -> vector<16x32xf32>
    %225 = arith.addf %224, %190 : vector<16x32xf32>
    %cst_97 = arith.constant dense<0.000000e+00> : vector<16xf32>
    %226 = vector.multi_reduction <add>, %225, %cst_97 [1] : vector<16x32xf32> to vector<16xf32>
    %227 = vector.shape_cast %226 : vector<16xf32> to vector<16x1xf32>
    %cst_98 = arith.constant 3.200000e+01 : f32
    %228 = vector.broadcast %cst_98 : f32 to vector<16x1xf32>
    %229 = arith.divf %227, %228 : vector<16x1xf32>
    %230 = vector.broadcast %229 : vector<16x1xf32> to vector<16x32xf32>
    %231 = arith.subf %225, %230 : vector<16x32xf32>
    %232 = arith.mulf %231, %231 : vector<16x32xf32>
    %cst_99 = arith.constant dense<0.000000e+00> : vector<16xf32>
    %233 = vector.multi_reduction <add>, %232, %cst_99 [1] : vector<16x32xf32> to vector<16xf32>
    %234 = vector.shape_cast %233 : vector<16xf32> to vector<16x1xf32>
    %cst_100 = arith.constant 3.200000e+01 : f32
    %235 = vector.broadcast %cst_100 : f32 to vector<16x1xf32>
    %236 = arith.divf %234, %235 : vector<16x1xf32>
    %cst_101 = arith.constant 9.99999974E-6 : f32
    %237 = vector.broadcast %cst_101 : f32 to vector<16x1xf32>
    %238 = arith.addf %236, %237 : vector<16x1xf32>
    %239 = math.rsqrt %238 : vector<16x1xf32>
    %240 = vector.broadcast %239 : vector<16x1xf32> to vector<16x32xf32>
    %241 = arith.mulf %231, %240 : vector<16x32xf32>
    %242 = vector.broadcast %132 : vector<1x32xf32> to vector<16x32xf32>
    %243 = arith.mulf %241, %242 : vector<16x32xf32>
    %244 = vector.broadcast %133 : vector<1x32xf32> to vector<16x32xf32>
    %245 = arith.addf %243, %244 : vector<16x32xf32>
    %cst_102 = arith.constant dense<0.000000e+00> : vector<16x32xf32>
    %246 = tpu.matmul %245, %126, %cst_102 {dimension_numbers = #tpu.dot_dimension_numbers<[1], [0], [0], [1], [0, 0, 1, 1], [], []>} : vector<16x32xf32>, vector<32x32xf32>, vector<16x32xf32> -> vector<16x32xf32>
    %247 = vector.broadcast %127 : vector<1x32xf32> to vector<16x32xf32>
    %248 = arith.addf %246, %247 : vector<16x32xf32>
    %cst_103 = arith.constant 0.000000e+00 : f32
    %249 = vector.broadcast %cst_103 : f32 to vector<16x32xf32>
    %250 = arith.cmpf ogt, %248, %249 : vector<16x32xf32>
    %cst_104 = arith.constant 0.000000e+00 : f32
    %251 = vector.broadcast %cst_104 : f32 to vector<16x32xf32>
    %252 = arith.minimumf %248, %251 : vector<16x32xf32>
    %253 = math.exp %252 : vector<16x32xf32>
    %cst_105 = arith.constant 1.000000e+00 : f32
    %254 = vector.broadcast %cst_105 : f32 to vector<16x32xf32>
    %255 = arith.subf %253, %254 : vector<16x32xf32>
    %256 = arith.select %250, %248, %255 : vector<16x32xi1>, vector<16x32xf32>
    %cst_106 = arith.constant dense<0.000000e+00> : vector<16x32xf32>
    %257 = tpu.matmul %256, %128, %cst_106 {dimension_numbers = #tpu.dot_dimension_numbers<[1], [0], [0], [1], [0, 0, 1, 1], [], []>} : vector<16x32xf32>, vector<32x32xf32>, vector<16x32xf32> -> vector<16x32xf32>
    %258 = vector.broadcast %129 : vector<1x32xf32> to vector<16x32xf32>
    %259 = arith.addf %257, %258 : vector<16x32xf32>
    %260 = arith.addf %245, %259 : vector<16x32xf32>
    %cst_107 = arith.constant dense<0.000000e+00> : vector<16xf32>
    %261 = vector.multi_reduction <add>, %260, %cst_107 [1] : vector<16x32xf32> to vector<16xf32>
    %262 = vector.shape_cast %261 : vector<16xf32> to vector<16x1xf32>
    %cst_108 = arith.constant 3.200000e+01 : f32
    %263 = vector.broadcast %cst_108 : f32 to vector<16x1xf32>
    %264 = arith.divf %262, %263 : vector<16x1xf32>
    %265 = vector.broadcast %264 : vector<16x1xf32> to vector<16x32xf32>
    %266 = arith.subf %260, %265 : vector<16x32xf32>
    %267 = arith.mulf %266, %266 : vector<16x32xf32>
    %cst_109 = arith.constant dense<0.000000e+00> : vector<16xf32>
    %268 = vector.multi_reduction <add>, %267, %cst_109 [1] : vector<16x32xf32> to vector<16xf32>
    %269 = vector.shape_cast %268 : vector<16xf32> to vector<16x1xf32>
    %cst_110 = arith.constant 3.200000e+01 : f32
    %270 = vector.broadcast %cst_110 : f32 to vector<16x1xf32>
    %271 = arith.divf %269, %270 : vector<16x1xf32>
    %cst_111 = arith.constant 9.99999974E-6 : f32
    %272 = vector.broadcast %cst_111 : f32 to vector<16x1xf32>
    %273 = arith.addf %271, %272 : vector<16x1xf32>
    %274 = math.rsqrt %273 : vector<16x1xf32>
    %275 = vector.broadcast %274 : vector<16x1xf32> to vector<16x32xf32>
    %276 = arith.mulf %266, %275 : vector<16x32xf32>
    %277 = vector.broadcast %134 : vector<1x32xf32> to vector<16x32xf32>
    %278 = arith.mulf %276, %277 : vector<16x32xf32>
    %279 = vector.broadcast %135 : vector<1x32xf32> to vector<16x32xf32>
    %280 = arith.addf %278, %279 : vector<16x32xf32>
    %c688 = arith.constant 688 : index
    %c0_112 = arith.constant 0 : index
    %281 = vector.load %arg0[%c688, %c0_112] : memref<952x128xf32, #tpu.memory_space<vmem>>, vector<256x4xf32>
    %c944 = arith.constant 944 : index
    %c0_113 = arith.constant 0 : index
    %282 = vector.load %arg0[%c944, %c0_113] : memref<952x128xf32, #tpu.memory_space<vmem>>, vector<1x4xf32>
    %283 = vector.extract_strided_slice %280 {offsets = [0, 0], sizes = [1, 32], strides = [1, 1]} : vector<16x32xf32> to vector<1x32xf32>
    %284 = vector.extract_strided_slice %281 {offsets = [0, 0], sizes = [32, 4], strides = [1, 1]} : vector<256x4xf32> to vector<32x4xf32>
    %cst_114 = arith.constant dense<0.000000e+00> : vector<1x4xf32>
    %285 = tpu.matmul %283, %284, %cst_114 {dimension_numbers = #tpu.dot_dimension_numbers<[1], [0], [0], [1], [0, 0, 1, 1], [], []>} : vector<1x32xf32>, vector<32x4xf32>, vector<1x4xf32> -> vector<1x4xf32>
    %286 = arith.addf %282, %285 : vector<1x4xf32>
    %287 = vector.extract_strided_slice %280 {offsets = [1, 0], sizes = [1, 32], strides = [1, 1]} : vector<16x32xf32> to vector<1x32xf32>
    %288 = vector.extract_strided_slice %281 {offsets = [32, 0], sizes = [32, 4], strides = [1, 1]} : vector<256x4xf32> to vector<32x4xf32>
    %cst_115 = arith.constant dense<0.000000e+00> : vector<1x4xf32>
    %289 = tpu.matmul %287, %288, %cst_115 {dimension_numbers = #tpu.dot_dimension_numbers<[1], [0], [0], [1], [0, 0, 1, 1], [], []>} : vector<1x32xf32>, vector<32x4xf32>, vector<1x4xf32> -> vector<1x4xf32>
    %290 = arith.addf %286, %289 : vector<1x4xf32>
    %291 = vector.extract_strided_slice %280 {offsets = [2, 0], sizes = [1, 32], strides = [1, 1]} : vector<16x32xf32> to vector<1x32xf32>
    %292 = vector.extract_strided_slice %281 {offsets = [64, 0], sizes = [32, 4], strides = [1, 1]} : vector<256x4xf32> to vector<32x4xf32>
    %cst_116 = arith.constant dense<0.000000e+00> : vector<1x4xf32>
    %293 = tpu.matmul %291, %292, %cst_116 {dimension_numbers = #tpu.dot_dimension_numbers<[1], [0], [0], [1], [0, 0, 1, 1], [], []>} : vector<1x32xf32>, vector<32x4xf32>, vector<1x4xf32> -> vector<1x4xf32>
    %294 = arith.addf %290, %293 : vector<1x4xf32>
    %295 = vector.extract_strided_slice %280 {offsets = [3, 0], sizes = [1, 32], strides = [1, 1]} : vector<16x32xf32> to vector<1x32xf32>
    %296 = vector.extract_strided_slice %281 {offsets = [96, 0], sizes = [32, 4], strides = [1, 1]} : vector<256x4xf32> to vector<32x4xf32>
    %cst_117 = arith.constant dense<0.000000e+00> : vector<1x4xf32>
    %297 = tpu.matmul %295, %296, %cst_117 {dimension_numbers = #tpu.dot_dimension_numbers<[1], [0], [0], [1], [0, 0, 1, 1], [], []>} : vector<1x32xf32>, vector<32x4xf32>, vector<1x4xf32> -> vector<1x4xf32>
    %298 = arith.addf %294, %297 : vector<1x4xf32>
    %299 = vector.extract_strided_slice %280 {offsets = [4, 0], sizes = [1, 32], strides = [1, 1]} : vector<16x32xf32> to vector<1x32xf32>
    %300 = vector.extract_strided_slice %281 {offsets = [128, 0], sizes = [32, 4], strides = [1, 1]} : vector<256x4xf32> to vector<32x4xf32>
    %cst_118 = arith.constant dense<0.000000e+00> : vector<1x4xf32>
    %301 = tpu.matmul %299, %300, %cst_118 {dimension_numbers = #tpu.dot_dimension_numbers<[1], [0], [0], [1], [0, 0, 1, 1], [], []>} : vector<1x32xf32>, vector<32x4xf32>, vector<1x4xf32> -> vector<1x4xf32>
    %302 = arith.addf %298, %301 : vector<1x4xf32>
    %303 = vector.extract_strided_slice %280 {offsets = [5, 0], sizes = [1, 32], strides = [1, 1]} : vector<16x32xf32> to vector<1x32xf32>
    %304 = vector.extract_strided_slice %281 {offsets = [160, 0], sizes = [32, 4], strides = [1, 1]} : vector<256x4xf32> to vector<32x4xf32>
    %cst_119 = arith.constant dense<0.000000e+00> : vector<1x4xf32>
    %305 = tpu.matmul %303, %304, %cst_119 {dimension_numbers = #tpu.dot_dimension_numbers<[1], [0], [0], [1], [0, 0, 1, 1], [], []>} : vector<1x32xf32>, vector<32x4xf32>, vector<1x4xf32> -> vector<1x4xf32>
    %306 = arith.addf %302, %305 : vector<1x4xf32>
    %307 = vector.extract_strided_slice %280 {offsets = [6, 0], sizes = [1, 32], strides = [1, 1]} : vector<16x32xf32> to vector<1x32xf32>
    %308 = vector.extract_strided_slice %281 {offsets = [192, 0], sizes = [32, 4], strides = [1, 1]} : vector<256x4xf32> to vector<32x4xf32>
    %cst_120 = arith.constant dense<0.000000e+00> : vector<1x4xf32>
    %309 = tpu.matmul %307, %308, %cst_120 {dimension_numbers = #tpu.dot_dimension_numbers<[1], [0], [0], [1], [0, 0, 1, 1], [], []>} : vector<1x32xf32>, vector<32x4xf32>, vector<1x4xf32> -> vector<1x4xf32>
    %310 = arith.addf %306, %309 : vector<1x4xf32>
    %311 = vector.extract_strided_slice %280 {offsets = [7, 0], sizes = [1, 32], strides = [1, 1]} : vector<16x32xf32> to vector<1x32xf32>
    %312 = vector.extract_strided_slice %281 {offsets = [224, 0], sizes = [32, 4], strides = [1, 1]} : vector<256x4xf32> to vector<32x4xf32>
    %cst_121 = arith.constant dense<0.000000e+00> : vector<1x4xf32>
    %313 = tpu.matmul %311, %312, %cst_121 {dimension_numbers = #tpu.dot_dimension_numbers<[1], [0], [0], [1], [0, 0, 1, 1], [], []>} : vector<1x32xf32>, vector<32x4xf32>, vector<1x4xf32> -> vector<1x4xf32>
    %314 = arith.addf %310, %313 : vector<1x4xf32>
    %c0_122 = arith.constant 0 : index
    %c0_123 = arith.constant 0 : index
    %315 = vector.load %arg2[%c0_122, %c0_123] : memref<2x4xf32, #tpu.memory_space<vmem>>, vector<1x4xf32>
    tpu.vector_store %arg2[%c0_122, %c0_123], %314 {strides = array<i32>} : memref<2x4xf32, #tpu.memory_space<vmem>>, vector<1x4xf32>,
    %316 = vector.extract_strided_slice %280 {offsets = [8, 0], sizes = [1, 32], strides = [1, 1]} : vector<16x32xf32> to vector<1x32xf32>
    %317 = vector.extract_strided_slice %281 {offsets = [0, 0], sizes = [32, 4], strides = [1, 1]} : vector<256x4xf32> to vector<32x4xf32>
    %cst_124 = arith.constant dense<0.000000e+00> : vector<1x4xf32>
    %318 = tpu.matmul %316, %317, %cst_124 {dimension_numbers = #tpu.dot_dimension_numbers<[1], [0], [0], [1], [0, 0, 1, 1], [], []>} : vector<1x32xf32>, vector<32x4xf32>, vector<1x4xf32> -> vector<1x4xf32>
    %319 = arith.addf %282, %318 : vector<1x4xf32>
    %320 = vector.extract_strided_slice %280 {offsets = [9, 0], sizes = [1, 32], strides = [1, 1]} : vector<16x32xf32> to vector<1x32xf32>
    %321 = vector.extract_strided_slice %281 {offsets = [32, 0], sizes = [32, 4], strides = [1, 1]} : vector<256x4xf32> to vector<32x4xf32>
    %cst_125 = arith.constant dense<0.000000e+00> : vector<1x4xf32>
    %322 = tpu.matmul %320, %321, %cst_125 {dimension_numbers = #tpu.dot_dimension_numbers<[1], [0], [0], [1], [0, 0, 1, 1], [], []>} : vector<1x32xf32>, vector<32x4xf32>, vector<1x4xf32> -> vector<1x4xf32>
    %323 = arith.addf %319, %322 : vector<1x4xf32>
    %324 = vector.extract_strided_slice %280 {offsets = [10, 0], sizes = [1, 32], strides = [1, 1]} : vector<16x32xf32> to vector<1x32xf32>
    %325 = vector.extract_strided_slice %281 {offsets = [64, 0], sizes = [32, 4], strides = [1, 1]} : vector<256x4xf32> to vector<32x4xf32>
    %cst_126 = arith.constant dense<0.000000e+00> : vector<1x4xf32>
    %326 = tpu.matmul %324, %325, %cst_126 {dimension_numbers = #tpu.dot_dimension_numbers<[1], [0], [0], [1], [0, 0, 1, 1], [], []>} : vector<1x32xf32>, vector<32x4xf32>, vector<1x4xf32> -> vector<1x4xf32>
    %327 = arith.addf %323, %326 : vector<1x4xf32>
    %328 = vector.extract_strided_slice %280 {offsets = [11, 0], sizes = [1, 32], strides = [1, 1]} : vector<16x32xf32> to vector<1x32xf32>
    %329 = vector.extract_strided_slice %281 {offsets = [96, 0], sizes = [32, 4], strides = [1, 1]} : vector<256x4xf32> to vector<32x4xf32>
    %cst_127 = arith.constant dense<0.000000e+00> : vector<1x4xf32>
    %330 = tpu.matmul %328, %329, %cst_127 {dimension_numbers = #tpu.dot_dimension_numbers<[1], [0], [0], [1], [0, 0, 1, 1], [], []>} : vector<1x32xf32>, vector<32x4xf32>, vector<1x4xf32> -> vector<1x4xf32>
    %331 = arith.addf %327, %330 : vector<1x4xf32>
    %332 = vector.extract_strided_slice %280 {offsets = [12, 0], sizes = [1, 32], strides = [1, 1]} : vector<16x32xf32> to vector<1x32xf32>
    %333 = vector.extract_strided_slice %281 {offsets = [128, 0], sizes = [32, 4], strides = [1, 1]} : vector<256x4xf32> to vector<32x4xf32>
    %cst_128 = arith.constant dense<0.000000e+00> : vector<1x4xf32>
    %334 = tpu.matmul %332, %333, %cst_128 {dimension_numbers = #tpu.dot_dimension_numbers<[1], [0], [0], [1], [0, 0, 1, 1], [], []>} : vector<1x32xf32>, vector<32x4xf32>, vector<1x4xf32> -> vector<1x4xf32>
    %335 = arith.addf %331, %334 : vector<1x4xf32>
    %336 = vector.extract_strided_slice %280 {offsets = [13, 0], sizes = [1, 32], strides = [1, 1]} : vector<16x32xf32> to vector<1x32xf32>
    %337 = vector.extract_strided_slice %281 {offsets = [160, 0], sizes = [32, 4], strides = [1, 1]} : vector<256x4xf32> to vector<32x4xf32>
    %cst_129 = arith.constant dense<0.000000e+00> : vector<1x4xf32>
    %338 = tpu.matmul %336, %337, %cst_129 {dimension_numbers = #tpu.dot_dimension_numbers<[1], [0], [0], [1], [0, 0, 1, 1], [], []>} : vector<1x32xf32>, vector<32x4xf32>, vector<1x4xf32> -> vector<1x4xf32>
    %339 = arith.addf %335, %338 : vector<1x4xf32>
    %340 = vector.extract_strided_slice %280 {offsets = [14, 0], sizes = [1, 32], strides = [1, 1]} : vector<16x32xf32> to vector<1x32xf32>
    %341 = vector.extract_strided_slice %281 {offsets = [192, 0], sizes = [32, 4], strides = [1, 1]} : vector<256x4xf32> to vector<32x4xf32>
    %cst_130 = arith.constant dense<0.000000e+00> : vector<1x4xf32>
    %342 = tpu.matmul %340, %341, %cst_130 {dimension_numbers = #tpu.dot_dimension_numbers<[1], [0], [0], [1], [0, 0, 1, 1], [], []>} : vector<1x32xf32>, vector<32x4xf32>, vector<1x4xf32> -> vector<1x4xf32>
    %343 = arith.addf %339, %342 : vector<1x4xf32>
    %344 = vector.extract_strided_slice %280 {offsets = [15, 0], sizes = [1, 32], strides = [1, 1]} : vector<16x32xf32> to vector<1x32xf32>
    %345 = vector.extract_strided_slice %281 {offsets = [224, 0], sizes = [32, 4], strides = [1, 1]} : vector<256x4xf32> to vector<32x4xf32>
    %cst_131 = arith.constant dense<0.000000e+00> : vector<1x4xf32>
    %346 = tpu.matmul %344, %345, %cst_131 {dimension_numbers = #tpu.dot_dimension_numbers<[1], [0], [0], [1], [0, 0, 1, 1], [], []>} : vector<1x32xf32>, vector<32x4xf32>, vector<1x4xf32> -> vector<1x4xf32>
    %347 = arith.addf %343, %346 : vector<1x4xf32>
    %c1 = arith.constant 1 : index
    %c0_132 = arith.constant 0 : index
    %348 = vector.load %arg2[%c1, %c0_132] : memref<2x4xf32, #tpu.memory_space<vmem>>, vector<1x4xf32>
    tpu.vector_store %arg2[%c1, %c0_132], %347 {strides = array<i32>} : memref<2x4xf32, #tpu.memory_space<vmem>>, vector<1x4xf32>,
    return
  }
}

</mosaic_0001>

<bundles_post_ra>
// kernel: tpu_custom_call.1
= control target key start
LH: loop header
LB: loop body
LE: loop exit
PB: predicated region body
PF: predicated region fallthrough
CT: control target
= control target key end

     0   :  { %7 = vsyncpa [#allocation3], 0  ;;  %s2872_s0 = inlined_call_operand.hbm [shape: f32[952,128], index: 0, kind: input, shape index: {}]   ;;  %s2873_s1 = inlined_call_operand.vmem [shape: f32[32,4], index: 1, kind: input, shape index: {}]   ;;  %s2874_s2 = inlined_call_operand.hbm [shape: f32[2,4], index: 2, kind: output, shape index: {}]  }
   0x1   :  { %8 = vsyncpa [#allocation4], 0  ;;  %s13_s11 = sshll.u32 %s2872_s0, 4  ;;  %s2379_s12 = smov [#allocation2]   ;;  %s14_s11 = int_to_ptr.hbm [resolvable:$true] %s13_s11 }
   0x2   :  { %s15_s13 = sshll.u32 %s2379_s12, 4  ;;  %s2380_s14 = smov 128   ;;  %s16_s13 = int_to_ptr.vmem [resolvable:$true] %s15_s13 }
   0x3   :  { %s2381_s15 = smov 8  }
   0x4   :  { %21 = dma.hbm_to_vmem [thread:$0]  %s14_s11, 15232, %s16_s13, [#allocation3], %s2380_s14, %s2380_s14, %s2381_s15  }
   0x5   :  { %2375 = dma.done.wait [#allocation3], 15232  }
   0x6   :  { %2376 = vsyncadd [#allocation3], 4294952064  ;;  %vm54_vm0 = vcmask 1043456   ;;  %vm41_vm1 = vcmask 31744   ;;  %v36_v0 = vld [vmem:[#allocation2 + $0x20] sm:$0xf] }
   0x7   :  { %v28_v1 = vld [vmem:[%s2873_s1] sm:$0xff]  ;;  %2128 = vmatpush.msk.msra.mxu0 %vm54_vm0, %v36_v0  ;;  %v94_v2 = vld [vmem:[#allocation2 + $0x58] sm:$0xff]  ;;  %v2410_v5 = vld [vmem:[%s2873_s1 + $0x8] sm:$0xff]  ;;  %vm121_vm2 = vcmask 261120   ;;  %vm221_vm3 = vcmask 130048   ;;  %s2118_s26 = sshll.u32 %s2874_s2, 4  ;;  %s2119_s26 = int_to_ptr.hbm [resolvable:$true] %s2118_s26 }
   0x8   :  { %2129 = vmatmul.msk.f32.vlgmr.msra.gmra.mxu0 %vm41_vm1, %v28_v1  ;;  %146 = vmatpush.msra.mxu1 %v94_v2  ;;  %v98_v3 = vld [vmem:[#allocation2 + $0x78] sm:$0xff]  ;;  %v30_v6 = vld [vmem:[%s2873_s1 + $0x10] sm:$0xff]  ;;  %v92_v11 = vld [vmem:[#allocation2 + $0x48] sm:$0xff] }
   0x9   :  { %v102_v4 = vld [vmem:[#allocation2 + $0x98] sm:$0xff]  ;;  %175 = vmatpush.msra.mxu2 %v98_v3  ;;  %v93_v8 = vld [vmem:[#allocation2 + $0x50] sm:$0xff]  ;;  %v96_v12 = vld [vmem:[#allocation2 + $0x68] sm:$0xff] }
   0xa   :  { %204 = vmatpush.msra.mxu3 %v102_v4  ;;  %v2421_v7 = vld [vmem:[%s2873_s1 + $0x18] sm:$0xff]  ;;  %v97_v9 = vld [vmem:[#allocation2 + $0x70] sm:$0xff]  ;;  %147 = vmatpush.msra.mxu1 %v93_v8  ;;  %v100_v13 = vld [vmem:[#allocation2 + $0x88] sm:$0xff]  ;;  %s2383_s1 = smov [#allocation5]  }
   0xb   :  { %v101_v10 = vld [vmem:[#allocation2 + $0x90] sm:$0xff]  ;;  %176 = vmatpush.msra.mxu2 %v97_v9  ;;  %v91_v14 = vld [vmem:[#allocation2 + $0x40] sm:$0xff]  ;;  %v2237_v17 = vld [vmem:[#allocation2 + $0x28] ss:$0 sm:$0xff]  ;;  %s2116_s23 = sshll.u32 %s2383_s1, 4  ;;  %s2117_s23 = int_to_ptr.vmem [resolvable:$true] %s2116_s23 }
   0xc   :  { %205 = vmatpush.msra.mxu3 %v101_v10  ;;  %148 = vmatpush.msra.mxu1 %v92_v11  ;;  %v95_v15 = vld [vmem:[#allocation2 + $0x60] sm:$0xff]  ;;  %v33_v22 = vld [vmem:[#allocation2 + $0x8] sm:$0xff]  ;;  %v34_v26 = vld [vmem:[#allocation2 + $0x10] sm:$0xff] }
   0xd   :  { %177 = vmatpush.msra.mxu2 %v96_v12  ;;  %v99_v16 = vld [vmem:[#allocation2 + $0x80] sm:$0xff]  ;;  %v35_v30 = vld [vmem:[#allocation2 + $0x18] sm:$0xff] }
   0xe   :  { %206 = vmatpush.msra.mxu3 %v100_v13  ;;  %149 = vmatpush.msra.mxu1 %v91_v14  ;;  %v32_v18 = vld [vmem:[#allocation2] sm:$0xff] }
   0xf   :  { %178 = vmatpush.msra.mxu2 %v95_v15 }
  0x10   :  { %2130 = vmatmul.msk.f32.gmra.mxu0 %vm41_vm1, %v2410_v5  ;;  %207 = vmatpush.msra.mxu3 %v99_v16 }
  0x18   :  { %2131 = vmatmul.msk.f32.gmra.mxu0 %vm41_vm1, %v30_v6 }
  0x20   :  { %2132 = vmatmul.msk.f32.gmra.mxu0 %vm41_vm1, %v2421_v7 }
  0x85   :  { %v75_v19 = vpop.f32.mrf.mxu0 }
  0x86   :  { %v76_v20 = vadd.f32 %v2237_v17, %v75_v19 }
  0x88   :  { %v2425_v21 = vadd.f32 %v76_v20, %v32_v18 }
  0x8a   :  { %2133 = vmatmul.msk.f32.vlgmr.msra.gmra.mxu1 %vm121_vm2, %v2425_v21  ;;  %2137 = vmatmul.msk.f32.vlgmr.msra.gmra.mxu2 %vm121_vm2, %v2425_v21 }
  0x8b   :  { %2141 = vmatmul.msk.f32.vlgmr.msra.gmra.mxu3 %vm121_vm2, %v2425_v21 }
  0x8d   :  { %v78_v23 = vpop.f32.mrf.mxu0 }
  0x8e   :  { %v79_v24 = vadd.f32 %v2237_v17, %v78_v23 }
  0x90   :  { %v2433_v25 = vadd.f32 %v79_v24, %v33_v22 }
  0x92   :  { %2134 = vmatmul.msk.f32.gmra.mxu1 %vm121_vm2, %v2433_v25  ;;  %2138 = vmatmul.msk.f32.gmra.mxu2 %vm121_vm2, %v2433_v25 }
  0x93   :  { %2142 = vmatmul.msk.f32.gmra.mxu3 %vm121_vm2, %v2433_v25 }
  0x95   :  { %v81_v27 = vpop.f32.mrf.mxu0 }
  0x96   :  { %v82_v28 = vadd.f32 %v2237_v17, %v81_v27 }
  0x98   :  { %v2441_v29 = vadd.f32 %v82_v28, %v34_v26 }
  0x9a   :  { %2135 = vmatmul.msk.f32.gmra.mxu1 %vm121_vm2, %v2441_v29  ;;  %2139 = vmatmul.msk.f32.gmra.mxu2 %vm121_vm2, %v2441_v29 }
  0x9b   :  { %2143 = vmatmul.msk.f32.gmra.mxu3 %vm121_vm2, %v2441_v29 }
  0x9d   :  { %v84_v31 = vpop.f32.mrf.mxu0 }
  0x9e   :  { %v85_v32 = vadd.f32 %v2237_v17, %v84_v31  ;;  %v106_v31 = vld [vmem:[#allocation2 + $0xb8] sm:$0xff] }
  0x9f   :  { %352 = vmatpush.msrb.mxu2 %v106_v31 }
  0xa0   :  { %v2449_v33 = vadd.f32 %v85_v32, %v35_v30  ;;  %v105_v32 = vld [vmem:[#allocation2 + $0xb0] sm:$0xff] }
  0xa1   :  { %353 = vmatpush.msrb.mxu2 %v105_v32 }
  0xa2   :  { %2136 = vmatmul.msk.f32.gmra.mxu1 %vm121_vm2, %v2449_v33  ;;  %2140 = vmatmul.msk.f32.gmra.mxu2 %vm121_vm2, %v2449_v33 }
  0xa3   :  { %2144 = vmatmul.msk.f32.gmra.mxu3 %vm121_vm2, %v2449_v33 }
 0x107   :  { %v151_v37 = vpop.f32.mrf.mxu1 }
 0x10d   :  { %v180_v34 = vpop.f32.mrf.mxu2 }
 0x10e   :  { %v209_v35 = vpop.f32.mrf.mxu3 }
 0x10f   :  { %v154_v41 = vpop.f32.mrf.mxu1 }
 0x115   :  { %v183_v36 = vpop.f32.mrf.mxu2 }
 0x116   :  { %v212_v38 = vpop.f32.mrf.mxu3  ;;  %2145 = vmatpush.xpose.msk.msrb.mxu0 %vm221_vm3, %v183_v36 }
 0x117   :  { %325 = vmatpush.msrb.mxu1 %v212_v38  ;;  %v157_v44 = vpop.f32.mrf.mxu1 }
 0x119   :  { %326 = vmatpush.msrb.mxu1 %v209_v35 }
 0x11a   :  { %2146 = vmatpush.xpose.msk.msrb.mxu0 %vm221_vm3, %v180_v34 }
 0x11b   :  { %493 = vmatpush.msra.mxu1 %v106_v31 }
 0x11d   :  { %v186_v39 = vpop.f32.mrf.mxu2  ;;  %2147 = vmatmul.msk.f32.vlgmr.msrb.gmra.mxu0 %vm221_vm3, %v151_v37  ;;  %v104_v37 = vld [vmem:[#allocation2 + $0xa8] sm:$0xff]  ;;  %494 = vmatpush.msra.mxu1 %v105_v32  ;;  %v850_v32 = vld [vmem:[#allocation2 + $0x130] sm:$0xff] }
 0x11e   :  { %v215_v40 = vpop.f32.mrf.mxu3  ;;  %354 = vmatpush.msrb.mxu2 %v104_v37 }
 0x11f   :  { %v160_v45 = vpop.f32.mrf.mxu1  ;;  %495 = vmatpush.msra.mxu1 %v104_v37 }
 0x125   :  { %v189_v42 = vpop.f32.mrf.mxu2  ;;  %2148 = vmatmul.msk.f32.gmra.mxu0 %vm221_vm3, %v154_v41 }
 0x126   :  { %v218_v43 = vpop.f32.mrf.mxu3  ;;  %2153 = vmatpush.xpose.msk.msrb.mxu3 %vm221_vm3, %v189_v42 }
 0x127   :  { %466 = vmatpush.msra.mxu0 %v218_v43 }
 0x129   :  { %467 = vmatpush.msra.mxu0 %v215_v40 }
 0x12a   :  { %2154 = vmatpush.xpose.msk.msrb.mxu3 %vm221_vm3, %v186_v39 }
 0x12d   :  { %2155 = vmatmul.msk.f32.vlgmr.msrb.gmra.mxu3 %vm221_vm3, %v157_v44 }
 0x135   :  { %2156 = vmatmul.msk.f32.gmra.mxu3 %vm221_vm3, %v160_v45 }
 0x19a   :  { %v251_v46 = vpop.f32.mrf.mxu0 }
 0x19b   :  { %v257_v47 = vsel %vm221_vm3, %v251_v46, -inf }
 0x19c   :  { %258 = vmax.xlane.f32.xlu0 %v257_v47 }
 0x1a2   :  { %v254_v48 = vpop.f32.mrf.mxu0 }
 0x1a3   :  { %v260_v49 = vsel %vm221_vm3, %v254_v48, -inf }
 0x1a4   :  { %261 = vmax.xlane.f32.xlu0 %v260_v49 }
 0x1b0   :  { %v392_v50 = vpop.f32.mrf.mxu3 }
 0x1b1   :  { %v398_v51 = vsel %vm221_vm3, %v392_v50, -inf }
 0x1b2   :  { %399 = vmax.xlane.f32.xlu1 %v398_v51 }
 0x1b8   :  { %v395_v52 = vpop.f32.mrf.mxu3 }
 0x1b9   :  { %v401_v53 = vsel %vm221_vm3, %v395_v52, -inf }
 0x1ba   :  { %402 = vmax.xlane.f32.xlu1 %v401_v53 }
 0x20f   :  { %v259_v54 = vpop.xlane.xlu0 %258 }
 0x210   :  { %v263_v55 = vsub.f32 %v251_v46, %v259_v54 }
 0x212   :  { %v265_v56 = vmul.f32 1.442695, %v263_v55 }
 0x214   :  { %2253 = vpow2.f32 %v265_v56 }
 0x217   :  { %v262_v57 = vpop.xlane.xlu0 %261 }
 0x218   :  { %v264_v58 = vsub.f32 %v254_v48, %v262_v57 }
 0x21a   :  { %v2254_v59 = vpop.eup %2253  ;;  %v267_v60 = vmul.f32 1.442695, %v264_v58 }
 0x21b   :  { %v269_v61 = vsel %vm221_vm3, %v2254_v59, 0.0 }
 0x21c   :  { %2255 = vpow2.f32 %v267_v60  ;;  %270 = vadd.xlane.f32.xlu2 %v269_v61 }
 0x222   :  { %v2470_v62 = vpop.eup %2255 }
 0x223   :  { %v272_v63 = vsel %vm221_vm3, %v2470_v62, 0.0 }
 0x224   :  { %273 = vadd.xlane.f32.xlu2 %v272_v63 }
 0x225   :  { %v400_v0 = vpop.xlane.xlu1 %399 }
 0x226   :  { %v404_v1 = vsub.f32 %v392_v50, %v400_v0 }
 0x228   :  { %v406_v2 = vmul.f32 1.442695, %v404_v1 }
 0x22a   :  { %2257 = vpow2.f32 %v406_v2 }
 0x22d   :  { %v403_v3 = vpop.xlane.xlu1 %402 }
 0x22e   :  { %v405_v4 = vsub.f32 %v395_v52, %v403_v3  ;;  %v103_v3 = vld [vmem:[#allocation2 + $0xa0] sm:$0xff] }
 0x22f   :  { %355 = vmatpush.msrb.mxu2 %v103_v3  ;;  %496 = vmatpush.msra.mxu1 %v103_v3  ;;  %v108_v3 = vld [vmem:[#allocation2 + $0xc8] sm:$0xff] }
 0x230   :  { %v2474_v6 = vpop.eup %2257  ;;  %v408_v8 = vmul.f32 1.442695, %v405_v4 }
 0x231   :  { %v410_v9 = vsel %vm221_vm3, %v2474_v6, 0.0 }
 0x232   :  { %2259 = vpow2.f32 %v408_v8  ;;  %411 = vadd.xlane.f32.xlu0 %v410_v9 }
 0x238   :  { %v2478_v10 = vpop.eup %2259 }
 0x239   :  { %v413_v11 = vsel %vm221_vm3, %v2478_v10, 0.0 }
 0x23a   :  { %414 = vadd.xlane.f32.xlu1 %v413_v11  ;;  %v38_v11 = vld [vmem:[#allocation2 + $0x30] sm:$0xf] }
 0x23b   :  { %2173 = vmatpush.msk.msrb.mxu0 %vm54_vm0, %v38_v11 }
 0x28f   :  { %v271_v12 = vpop.xlane.xlu2 %270 }
 0x290   :  { %2261 = vrcp.f32 %v271_v12  ;;  %v286_v17 = vand.u32 2147483648, %v271_v12  ;;  %v284_v19 = vand.u32 2147483647, %v271_v12  ;;  %vm280_vm5 = vweird.f32 %v271_v12 }
 0x292   :  { %v287_v23 = vor.u32 1.1754944e-38, %v286_v17  ;;  %vm285_vm7 = vcmp.eq.f32.partialorder %v284_v19, 8.507059e+37 }
 0x296   :  { %v2262_v13 = vpop.eup %2261 }
 0x297   :  { %v276_v14 = vmul.f32 %v2262_v13, %v271_v12  ;;  %v274_v15 = vpop.xlane.xlu2 %273  ;;  %vm281_vm4 = vweird.f32 %v2262_v13 }
 0x298   :  { %2263 = vrcp.f32 %v274_v15  ;;  %vm282_vm6 = vmor %vm280_vm5, %vm281_vm4  ;;  %v301_v34 = vand.u32 2147483648, %v274_v15  ;;  %v299_v36 = vand.u32 2147483647, %v274_v15  ;;  %vm295_vm9 = vweird.f32 %v274_v15 }
 0x299   :  { %v277_v16 = vsub.f32 1.0, %v276_v14 }
 0x29a   :  { %v302_v40 = vor.u32 1.1754944e-38, %v301_v34  ;;  %vm300_vm11 = vcmp.eq.f32.partialorder %v299_v36, 8.507059e+37  ;;  %v857_v34 = vld [vmem:[#allocation2 + $0x168] sm:$0xff] }
 0x29b   :  { %v278_v18 = vmul.f32 %v2262_v13, %v277_v16 }
 0x29d   :  { %v279_v20 = vadd.f32 %v2262_v13, %v278_v18 }
 0x29e   :  { %v2264_v22 = vpop.eup %2263 }
 0x29f   :  { %v291_v24 = vmul.f32 %v2264_v22, %v274_v15  ;;  %v283_v26 = vsel %vm282_vm6, %v2262_v13, %v279_v20  ;;  %vm296_vm8 = vweird.f32 %v2264_v22 }
 0x2a0   :  { %v288_v27 = vsel %vm285_vm7, %v287_v23, %v283_v26  ;;  %vm297_vm10 = vmor %vm295_vm9, %vm296_vm8  ;;  %v853_v26 = vld [vmem:[#allocation2 + $0x148] sm:$0xff] }
 0x2a1   :  { %v292_v28 = vsub.f32 1.0, %v291_v24  ;;  %v289_v30 = vmul.f32 %v2254_v59, %v288_v27  ;;  %v852_v27 = vld [vmem:[#allocation2 + $0x140] sm:$0xff] }
 0x2a3   :  { %v293_v35 = vmul.f32 %v2264_v22, %v292_v28  ;;  %2149 = vmatmul.msk.f32.vlgmr.msrb.gmra.mxu1 %vm221_vm3, %v289_v30  ;;  %v851_v28 = vld [vmem:[#allocation2 + $0x138] sm:$0xff] }
 0x2a4   :  { %916 = vmatpush.msrb.mxu1 %v853_v26  ;;  %v2239_v26 = vld [vmem:[#allocation2 + $0x110] ss:$0 sm:$0xff] }
 0x2a5   :  { %v412_v38 = vpop.xlane.xlu0 %411  ;;  %v294_v39 = vadd.f32 %v2264_v22, %v293_v35  ;;  %v861_v35 = vld [vmem:[#allocation2 + $0x188] sm:$0xff] }
 0x2a6   :  { %2265 = vrcp.f32 %v412_v38  ;;  %v427_v48 = vand.u32 2147483648, %v412_v38  ;;  %v425_v50 = vand.u32 2147483647, %v412_v38  ;;  %vm421_vm13 = vweird.f32 %v412_v38  ;;  %917 = vmatpush.msrb.mxu1 %v852_v27  ;;  %v112_v27 = vld [vmem:[#allocation2 + $0xe8] sm:$0xff] }
 0x2a7   :  { %v298_v41 = vsel %vm297_vm10, %v2264_v22, %v294_v39 }
 0x2a8   :  { %v303_v42 = vsel %vm300_vm11, %v302_v40, %v298_v41  ;;  %v428_v53 = vor.u32 1.1754944e-38, %v427_v48  ;;  %vm426_vm15 = vcmp.eq.f32.partialorder %v425_v50, 8.507059e+37  ;;  %918 = vmatpush.msrb.mxu1 %v851_v28  ;;  %v860_v40 = vld [vmem:[#allocation2 + $0x180] sm:$0xff]  ;;  %v855_v41 = vld [vmem:[#allocation2 + $0x158] sm:$0xff] }
 0x2a9   :  { %v304_v43 = vmul.f32 %v2470_v62, %v303_v42 }
 0x2aa   :  { %919 = vmatpush.msrb.mxu1 %v850_v32 }
 0x2ab   :  { %2150 = vmatmul.msk.f32.gmra.mxu1 %vm221_vm3, %v304_v43  ;;  %v859_v43 = vld [vmem:[#allocation2 + $0x178] sm:$0xff] }
 0x2ac   :  { %v2266_v44 = vpop.eup %2265 }
 0x2ad   :  { %v417_v45 = vmul.f32 %v2266_v44, %v412_v38  ;;  %v415_v46 = vpop.xlane.xlu1 %414  ;;  %vm422_vm12 = vweird.f32 %v2266_v44  ;;  %v856_v38 = vld [vmem:[#allocation2 + $0x160] sm:$0xff] }
 0x2ae   :  { %2267 = vrcp.f32 %v415_v46  ;;  %vm423_vm14 = vmor %vm421_vm13, %vm422_vm12  ;;  %v442_v59 = vand.u32 2147483648, %v415_v46  ;;  %v440_v61 = vand.u32 2147483647, %v415_v46  ;;  %vm436_vm5 = vweird.f32 %v415_v46 }
 0x2af   :  { %v418_v47 = vsub.f32 1.0, %v417_v45 }
 0x2b0   :  { %v443_v63 = vor.u32 1.1754944e-38, %v442_v59  ;;  %vm441_vm7 = vcmp.eq.f32.partialorder %v440_v61, 8.507059e+37 }
 0x2b1   :  { %v419_v49 = vmul.f32 %v2266_v44, %v418_v47 }
 0x2b3   :  { %v420_v51 = vadd.f32 %v2266_v44, %v419_v49 }
 0x2b4   :  { %v2268_v52 = vpop.eup %2267 }
 0x2b5   :  { %v424_v54 = vsel %vm423_vm14, %v2266_v44, %v420_v51  ;;  %v432_v55 = vmul.f32 %v2268_v52, %v415_v46  ;;  %vm437_vm4 = vweird.f32 %v2268_v52  ;;  %v854_v44 = vld [vmem:[#allocation2 + $0x150] sm:$0xff] }
 0x2b6   :  { %v429_v56 = vsel %vm426_vm15, %v428_v53, %v424_v54  ;;  %vm438_vm6 = vmor %vm436_vm5, %vm437_vm4  ;;  %v858_v46 = vld [vmem:[#allocation2 + $0x170] sm:$0xff] }
 0x2b7   :  { %v433_v57 = vsub.f32 1.0, %v432_v55  ;;  %v430_v58 = vmul.f32 %v2474_v6, %v429_v56 }
 0x2b9   :  { %v434_v60 = vmul.f32 %v2268_v52, %v433_v57  ;;  %2157 = vmatmul.msk.f32.vlgmr.msra.gmra.mxu0 %vm221_vm3, %v430_v58 }
 0x2ba   :  { %939 = vmatpush.msra.mxu0 %v857_v34  ;;  %v2240_v34 = vld [vmem:[#allocation2 + $0x118] ss:$0 sm:$0xff] }
 0x2bb   :  { %v435_v62 = vadd.f32 %v2268_v52, %v434_v60 }
 0x2bc   :  { %940 = vmatpush.msra.mxu0 %v856_v38 }
 0x2bd   :  { %v439_v0 = vsel %vm438_vm6, %v2268_v52, %v435_v62 }
 0x2be   :  { %v444_v1 = vsel %vm441_vm7, %v443_v63, %v439_v0  ;;  %941 = vmatpush.msra.mxu0 %v855_v41 }
 0x2bf   :  { %v445_v2 = vmul.f32 %v2478_v10, %v444_v1  ;;  %v110_v1 = vld [vmem:[#allocation2 + $0xd8] sm:$0xff] }
 0x2c0   :  { %942 = vmatpush.msra.mxu0 %v854_v44  ;;  %638 = vmatpush.msra.mxu2 %v110_v1 }
 0x2c1   :  { %2158 = vmatmul.msk.f32.gmra.mxu0 %vm221_vm3, %v445_v2  ;;  %v109_v2 = vld [vmem:[#allocation2 + $0xd0] sm:$0xff] }
 0x2c2   :  { %639 = vmatpush.msra.mxu2 %v109_v2 }
 0x2c4   :  { %640 = vmatpush.msra.mxu2 %v108_v3 }
 0x2c9   :  { %2174 = vmatmul.msk.f32.vlgmr.msrb.gmra.mxu0 %vm41_vm1, %v2410_v5 }
 0x2d1   :  { %2175 = vmatmul.msk.f32.gmra.mxu0 %vm41_vm1, %v2421_v7 }
 0x320   :  { %v328_v4 = vpop.f32.mrf.mxu1 }
 0x321   :  { %2151 = vmatmul.msk.f32.vlgmr.msrb.gmra.mxu2 %vm121_vm2, %v328_v4  ;;  %v107_v4 = vld [vmem:[#allocation2 + $0xc0] sm:$0xff] }
 0x322   :  { %641 = vmatpush.msra.mxu2 %v107_v4 }
 0x328   :  { %v331_v6 = vpop.f32.mrf.mxu1 }
 0x329   :  { %2152 = vmatmul.msk.f32.gmra.mxu2 %vm121_vm2, %v331_v6 }
 0x336   :  { %v469_v8 = vpop.f32.mrf.mxu0 }
 0x337   :  { %2159 = vmatmul.msk.f32.vlgmr.msra.gmra.mxu1 %vm121_vm2, %v469_v8 }
 0x338   :  { %962 = vmatpush.msra.mxu1 %v861_v35 }
 0x33a   :  { %963 = vmatpush.msra.mxu1 %v860_v40 }
 0x33c   :  { %964 = vmatpush.msra.mxu1 %v859_v43 }
 0x33e   :  { %v472_v9 = vpop.f32.mrf.mxu0  ;;  %965 = vmatpush.msra.mxu1 %v858_v46 }
 0x33f   :  { %2160 = vmatmul.msk.f32.gmra.mxu1 %vm121_vm2, %v472_v9 }
 0x346   :  { %v844_v37 = vpop.f32.mrf.mxu0 }
 0x34e   :  { %v847_v50 = vpop.f32.mrf.mxu0 }
 0x3a4   :  { %v357_v10 = vpop.f32.mrf.mxu2 }
 0x3a5   :  { %v504_v12 = vadd.f32 %v357_v10, %v2425_v21 }
 0x3a7   :  { %v508_v13 = vsel %vm121_vm2, %v504_v12, 0.0 }
 0x3a8   :  { %509 = vadd.xlane.f32.xlu2 %v508_v13 }
 0x3ac   :  { %v360_v14 = vpop.f32.mrf.mxu2 }
 0x3ad   :  { %v505_v15 = vadd.f32 %v360_v14, %v2433_v25  ;;  %v2382_v25 = vmov 32.0  }
 0x3ae   :  { %2269 = vrcp.f32 %v2382_v25 }
 0x3af   :  { %v511_v16 = vsel %vm121_vm2, %v505_v15, 0.0 }
 0x3b0   :  { %512 = vadd.xlane.f32.xlu0 %v511_v16 }
 0x3b4   :  { %v498_v17 = vpop.f32.mrf.mxu1  ;;  %v2270_v20 = vpop.eup %2269 }
 0x3b5   :  { %v2503_v18 = vadd.f32 %v498_v17, %v2441_v29  ;;  %v521_v22 = vmul.f32 32.0, %v2270_v20  ;;  %vm525_vm0 = vweird.f32 %v2270_v20  ;;  %v115_v17 = vld [vmem:[#allocation2 + $0x100] sm:$0xff] }
 0x3b6   :  { %704 = vmatpush.msra.mxu3 %v115_v17 }
 0x3b7   :  { %v514_v5 = vsel %vm121_vm2, %v2503_v18, 0.0  ;;  %v522_v23 = vsub.f32 1.0, %v521_v22 }
 0x3b8   :  { %515 = vadd.xlane.f32.xlu1 %v514_v5 }
 0x3b9   :  { %v523_v24 = vmul.f32 %v2270_v20, %v522_v23 }
 0x3bb   :  { %v524_v29 = vadd.f32 %v2270_v20, %v523_v24 }
 0x3bc   :  { %v501_v21 = vpop.f32.mrf.mxu1 }
 0x3bd   :  { %v2508_v19 = vadd.f32 %v501_v21, %v2449_v33  ;;  %v2512_v30 = vsel %vm525_vm0, %v2270_v20, %v524_v29  ;;  %v2238_v33 = vld [vmem:[#allocation2 + $0x38] ss:$0 sm:$0xff] }
 0x3be   :  { %v2515_v39 = vadd.f32 %v2238_v33, %v844_v37  ;;  %v2527_v51 = vadd.f32 %v2238_v33, %v847_v50 }
 0x3bf   :  { %v517_v7 = vsel %vm121_vm2, %v2508_v19, 0.0 }
 0x3c0   :  { %518 = vadd.xlane.f32.xlu2 %v517_v7  ;;  %2176 = vmatmul.msk.f32.vlgmr.msrb.gmra.mxu1 %vm121_vm2, %v2515_v39 }
 0x3c1   :  { %2178 = vmatmul.msk.f32.vlgmr.msra.gmra.mxu0 %vm121_vm2, %v2515_v39 }
 0x3c8   :  { %2177 = vmatmul.msk.f32.gmra.mxu1 %vm121_vm2, %v2527_v51 }
 0x3c9   :  { %2179 = vmatmul.msk.f32.gmra.mxu0 %vm121_vm2, %v2527_v51 }
 0x3d0   :  { %2180 = vmatmul.msk.f32.vlgmr.msra.gmra.mxu1 %vm121_vm2, %v2515_v39 }
 0x3d8   :  { %2181 = vmatmul.msk.f32.gmra.mxu1 %vm121_vm2, %v2527_v51 }
 0x41b   :  { %v510_v31 = vpop.xlane.xlu2 %509 }
 0x41c   :  { %v527_v36 = vmul.f32 %v2512_v30, %v510_v31 }
 0x41e   :  { %v2517_v42 = vsub.f32 %v504_v12, %v527_v36 }
 0x420   :  { %v535_v45 = vmul.f32 %v2517_v42, %v2517_v42 }
 0x422   :  { %v539_v47 = vsel %vm121_vm2, %v535_v45, 0.0 }
 0x423   :  { %540 = vadd.xlane.f32.xlu0 %v539_v47  ;;  %v513_v48 = vpop.xlane.xlu0 %512 }
 0x424   :  { %v528_v49 = vmul.f32 %v2512_v30, %v513_v48 }
 0x426   :  { %v2529_v52 = vsub.f32 %v505_v15, %v528_v49 }
 0x428   :  { %v536_v53 = vmul.f32 %v2529_v52, %v2529_v52 }
 0x42a   :  { %v542_v54 = vsel %vm121_vm2, %v536_v53, 0.0 }
 0x42b   :  { %v516_v55 = vpop.xlane.xlu1 %515  ;;  %543 = vadd.xlane.f32.xlu1 %v542_v54 }
 0x42c   :  { %v529_v56 = vmul.f32 %v2512_v30, %v516_v55 }
 0x42e   :  { %v2540_v57 = vsub.f32 %v2503_v18, %v529_v56  ;;  %v114_v18 = vld [vmem:[#allocation2 + $0xf8] sm:$0xff] }
 0x42f   :  { %705 = vmatpush.msra.mxu3 %v114_v18 }
 0x430   :  { %v537_v58 = vmul.f32 %v2540_v57, %v2540_v57 }
 0x432   :  { %v545_v59 = vsel %vm121_vm2, %v537_v58, 0.0 }
 0x433   :  { %546 = vadd.xlane.f32.xlu2 %v545_v59  ;;  %v519_v60 = vpop.xlane.xlu2 %518 }
 0x434   :  { %v530_v61 = vmul.f32 %v2512_v30, %v519_v60 }
 0x436   :  { %v2549_v62 = vsub.f32 %v2508_v19, %v530_v61  ;;  %v113_v19 = vld [vmem:[#allocation2 + $0xf0] sm:$0xff] }
 0x437   :  { %706 = vmatpush.msra.mxu3 %v113_v19 }
 0x438   :  { %v538_v63 = vmul.f32 %v2549_v62, %v2549_v62 }
 0x439   :  { %707 = vmatpush.msra.mxu3 %v112_v27 }
 0x43a   :  { %v548_v0 = vsel %vm121_vm2, %v538_v63, 0.0 }
 0x43b   :  { %549 = vadd.xlane.f32.xlu0 %v548_v0 }
 0x43d   :  { %v2558_v12 = vpop.f32.mrf.mxu1 }
 0x43e   :  { %v944_v28 = vpop.f32.mrf.mxu0 }
 0x43f   :  { %2182 = vmatpush.xpose.msk.msrb.mxu2 %vm221_vm3, %v944_v28 }
 0x445   :  { %v2561_v20 = vpop.f32.mrf.mxu1 }
 0x446   :  { %v947_v19 = vpop.f32.mrf.mxu0 }
 0x44d   :  { %v967_v41 = vpop.f32.mrf.mxu1 }
 0x44e   :  { %1042 = vmatpush.msrb.mxu3 %v967_v41 }
 0x496   :  { %v541_v6 = vpop.xlane.xlu0 %540 }
 0x497   :  { %v551_v8 = vmul.f32 %v541_v6, %v2512_v30 }
 0x499   :  { %v555_v9 = vadd.f32 1e-05, %v551_v8 }
 0x49b   :  { %2271 = vrsqrt.f32 %v555_v9  ;;  %vm565_vm8 = vweird.f32 %v555_v9 }
 0x49e   :  { %v544_v11 = vpop.xlane.xlu1 %543 }
 0x49f   :  { %v552_v10 = vmul.f32 %v544_v11, %v2512_v30  ;;  %v2241_v11 = vld [vmem:[#allocation2 + $0xe0] ss:$0 sm:$0xff] }
 0x4a1   :  { %v2272_v13 = vpop.eup %2271  ;;  %v556_v14 = vadd.f32 1e-05, %v552_v10 }
 0x4a2   :  { %v560_v15 = vmul.f32 %v2272_v13, %v555_v9  ;;  %vm566_vm1 = vweird.f32 %v2272_v13 }
 0x4a3   :  { %2273 = vrsqrt.f32 %v556_v14  ;;  %vm567_vm9 = vmor %vm565_vm8, %vm566_vm1  ;;  %vm575_vm11 = vweird.f32 %v556_v14  ;;  %vm999_vm1 = vcmask 64512  }
 0x4a4   :  { %v561_v16 = vmul.f32 %v2272_v13, %v560_v15 }
 0x4a6   :  { %v562_v5 = vmul.f32 0.5, %v561_v16  ;;  %v547_v21 = vpop.xlane.xlu2 %546 }
 0x4a7   :  { %v553_v7 = vmul.f32 %v547_v21, %v2512_v30 }
 0x4a8   :  { %v563_v25 = vsub.f32 1.5, %v562_v5 }
 0x4a9   :  { %v2274_v22 = vpop.eup %2273  ;;  %v557_v23 = vadd.f32 1e-05, %v553_v7 }
 0x4aa   :  { %v564_v24 = vmul.f32 %v2272_v13, %v563_v25  ;;  %v570_v29 = vmul.f32 %v2274_v22, %v556_v14  ;;  %vm576_vm10 = vweird.f32 %v2274_v22 }
 0x4ab   :  { %2275 = vrsqrt.f32 %v557_v23  ;;  %vm577_vm12 = vmor %vm575_vm11, %vm576_vm10  ;;  %vm585_vm14 = vweird.f32 %v557_v23 }
 0x4ac   :  { %v568_v33 = vsel %vm567_vm9, %v2272_v13, %v564_v24  ;;  %v571_v31 = vmul.f32 %v2274_v22, %v570_v29 }
 0x4ad   :  { %v599_v32 = vmul.f32 %v568_v33, %v2517_v42 }
 0x4ae   :  { %v572_v35 = vmul.f32 0.5, %v571_v31  ;;  %v550_v36 = vpop.xlane.xlu0 %549 }
 0x4af   :  { %v604_v37 = vmul.f32 %v2239_v26, %v599_v32  ;;  %v554_v38 = vmul.f32 %v550_v36, %v2512_v30 }
 0x4b0   :  { %v573_v40 = vsub.f32 1.5, %v572_v35 }
 0x4b1   :  { %v2276_v43 = vpop.eup %2275  ;;  %v558_v44 = vadd.f32 1e-05, %v554_v38  ;;  %v2566_v45 = vadd.f32 %v2240_v34, %v604_v37 }
 0x4b2   :  { %v574_v46 = vmul.f32 %v2274_v22, %v573_v40  ;;  %v580_v47 = vmul.f32 %v2276_v43, %v557_v23  ;;  %vm586_vm13 = vweird.f32 %v2276_v43 }
 0x4b3   :  { %2277 = vrsqrt.f32 %v558_v44  ;;  %2161 = vmatmul.msk.f32.vlgmr.msra.gmra.mxu2 %vm121_vm2, %v2566_v45  ;;  %vm587_vm15 = vmor %vm585_vm14, %vm586_vm13  ;;  %vm595_vm5 = vweird.f32 %v558_v44 }
 0x4b4   :  { %v578_v42 = vsel %vm577_vm12, %v2274_v22, %v574_v46  ;;  %v581_v48 = vmul.f32 %v2276_v43, %v580_v47 }
 0x4b5   :  { %v600_v49 = vmul.f32 %v578_v42, %v2529_v52  ;;  %v2593_v42 = vld [vmem:[#allocation2 + $0x108] ss:$0 sm:$0xff] }
 0x4b6   :  { %v582_v50 = vmul.f32 0.5, %v581_v48 }
 0x4b7   :  { %v605_v53 = vmul.f32 %v2239_v26, %v600_v49 }
 0x4b8   :  { %v583_v54 = vsub.f32 1.5, %v582_v50 }
 0x4b9   :  { %v2278_v55 = vpop.eup %2277  ;;  %v2571_v56 = vadd.f32 %v2240_v34, %v605_v53 }
 0x4ba   :  { %v584_v58 = vmul.f32 %v2276_v43, %v583_v54  ;;  %v590_v59 = vmul.f32 %v2278_v55, %v558_v44  ;;  %vm596_vm4 = vweird.f32 %v2278_v55 }
 0x4bb   :  { %2162 = vmatmul.msk.f32.gmra.mxu2 %vm121_vm2, %v2571_v56  ;;  %vm597_vm6 = vmor %vm595_vm5, %vm596_vm4 }
 0x4bc   :  { %v588_v60 = vsel %vm587_vm15, %v2276_v43, %v584_v58  ;;  %v591_v61 = vmul.f32 %v2278_v55, %v590_v59 }
 0x4bd   :  { %v601_v63 = vmul.f32 %v588_v60, %v2540_v57  ;;  %v970_v57 = vpop.f32.mrf.mxu1 }
 0x4be   :  { %v592_v0 = vmul.f32 0.5, %v591_v61  ;;  %1138 = vmatpush.msrb.mxu0 %v970_v57 }
 0x4bf   :  { %v606_v52 = vmul.f32 %v2239_v26, %v601_v63 }
 0x4c0   :  { %v593_v1 = vsub.f32 1.5, %v592_v0 }
 0x4c1   :  { %v2576_v2 = vadd.f32 %v2240_v34, %v606_v52 }
 0x4c2   :  { %v594_v3 = vmul.f32 %v2278_v55, %v593_v1 }
 0x4c3   :  { %2163 = vmatmul.msk.f32.gmra.mxu2 %vm121_vm2, %v2576_v2 }
 0x4c4   :  { %v598_v4 = vsel %vm597_vm6, %v2278_v55, %v594_v3 }
 0x4c5   :  { %v602_v6 = vmul.f32 %v598_v4, %v2549_v62 }
 0x4c7   :  { %v607_v8 = vmul.f32 %v2239_v26, %v602_v6 }
 0x4c9   :  { %v2581_v9 = vadd.f32 %v2240_v34, %v607_v8 }
 0x4cb   :  { %2164 = vmatmul.msk.f32.gmra.mxu2 %vm121_vm2, %v2581_v9 }
 0x4d3   :  { %2183 = vmatmul.msk.f32.vlgmr.msrb.gmra.mxu2 %vm221_vm3, %v2558_v12 }
 0x536   :  { %v643_v10 = vpop.f32.mrf.mxu2 }
 0x537   :  { %v644_v13 = vadd.f32 %v2241_v11, %v643_v10 }
 0x539   :  { %v659_v14 = vmin.f32 %v644_v13, 0.0  ;;  %vm655_vm7 = vcmp.gt.f32.partialorder %v644_v13, 0.0 }
 0x53b   :  { %v663_v15 = vmul.f32 1.442695, %v659_v14 }
 0x53d   :  { %2279 = vpow2.f32 %v663_v15 }
 0x53e   :  { %v646_v16 = vpop.f32.mrf.mxu2 }
 0x53f   :  { %v647_v17 = vadd.f32 %v2241_v11, %v646_v16 }
 0x541   :  { %v660_v62 = vmin.f32 %v647_v17, 0.0  ;;  %vm656_vm0 = vcmp.gt.f32.partialorder %v647_v17, 0.0 }
 0x543   :  { %v2280_v18 = vpop.eup %2279  ;;  %v665_v5 = vmul.f32 1.442695, %v660_v62 }
 0x544   :  { %v2165_v21 = vadd.f32 -1.0, %v2280_v18  ;;  %v865_v18 = vld [vmem:[#allocation2 + $0x1a8] sm:$0xff] }
 0x545   :  { %2281 = vpow2.f32 %v665_v5  ;;  %1062 = vmatpush.msra.mxu2 %v865_v18  ;;  %1158 = vmatpush.msrb.mxu1 %v865_v18  ;;  %v864_v5 = vld [vmem:[#allocation2 + $0x1a0] sm:$0xff] }
 0x546   :  { %v675_v7 = vsel %vm655_vm7, %v644_v13, %v2165_v21  ;;  %v649_v25 = vpop.f32.mrf.mxu2  ;;  %v863_v21 = vld [vmem:[#allocation2 + $0x198] sm:$0xff] }
 0x547   :  { %v650_v12 = vadd.f32 %v2241_v11, %v649_v25  ;;  %2169 = vmatmul.msk.f32.vlgmr.msra.gmra.mxu3 %vm121_vm2, %v675_v7  ;;  %1063 = vmatpush.msra.mxu2 %v864_v5  ;;  %v872_v7 = vld [vmem:[#allocation2 + $0x1e0] sm:$0xff]  ;;  %v871_v25 = vld [vmem:[#allocation2 + $0x1d8] sm:$0xff] }
 0x548   :  { %2186 = vmatpush.xpose.msk.msra.mxu3 %vm221_vm3, %v947_v19  ;;  %1159 = vmatpush.msrb.mxu1 %v864_v5  ;;  %v862_v19 = vld [vmem:[#allocation2 + $0x190] sm:$0xff] }
 0x549   :  { %v661_v22 = vmin.f32 %v650_v12, 0.0  ;;  %vm657_vm8 = vcmp.gt.f32.partialorder %v650_v12, 0.0  ;;  %1064 = vmatpush.msra.mxu2 %v863_v21 }
 0x54a   :  { %1160 = vmatpush.msrb.mxu1 %v863_v21 }
 0x54b   :  { %v2282_v23 = vpop.eup %2281  ;;  %v667_v24 = vmul.f32 1.442695, %v661_v22  ;;  %1065 = vmatpush.msra.mxu2 %v862_v19 }
 0x54c   :  { %v2166_v29 = vadd.f32 -1.0, %v2282_v23  ;;  %1161 = vmatpush.msrb.mxu1 %v862_v19 }
 0x54d   :  { %2283 = vpow2.f32 %v667_v24 }
 0x54e   :  { %v652_v26 = vpop.f32.mrf.mxu2  ;;  %v676_v27 = vsel %vm656_vm0, %v647_v17, %v2166_v29 }
 0x54f   :  { %v653_v28 = vadd.f32 %v2241_v11, %v652_v26  ;;  %2170 = vmatmul.msk.f32.gmra.mxu3 %vm121_vm2, %v676_v27 }
 0x551   :  { %v662_v33 = vmin.f32 %v653_v28, 0.0  ;;  %vm658_vm9 = vcmp.gt.f32.partialorder %v653_v28, 0.0 }
 0x553   :  { %v2284_v31 = vpop.eup %2283  ;;  %v669_v32 = vmul.f32 1.442695, %v662_v33 }
 0x554   :  { %v2167_v34 = vadd.f32 -1.0, %v2284_v31 }
 0x555   :  { %2285 = vpow2.f32 %v669_v32 }
 0x556   :  { %v996_v35 = vpop.f32.mrf.mxu2  ;;  %v677_v36 = vsel %vm657_vm8, %v650_v12, %v2167_v34  ;;  %v870_v12 = vld [vmem:[#allocation2 + $0x1d0] sm:$0xff] }
 0x557   :  { %2171 = vmatmul.msk.f32.gmra.mxu3 %vm121_vm2, %v677_v36  ;;  %v1000_v37 = vsel %vm999_vm1, %v996_v35, -inf }
 0x558   :  { %1001 = vmax.xlane.f32.xlu1 %v1000_v37 }
 0x55b   :  { %v2286_v38 = vpop.eup %2285 }
 0x55c   :  { %v2168_v40 = vadd.f32 -1.0, %v2286_v38 }
 0x55e   :  { %v678_v41 = vsel %vm658_vm9, %v653_v28, %v2168_v40  ;;  %v2621_v40 = vld [vmem:[#allocation2 + $0x120] ss:$0 sm:$0xff] }
 0x55f   :  { %2172 = vmatmul.msk.f32.gmra.mxu3 %vm121_vm2, %v678_v41 }
 0x5ca   :  { %v709_v43 = vpop.f32.mrf.mxu3 }
 0x5cb   :  { %v1002_v44 = vpop.xlane.xlu1 %1001  ;;  %v710_v53 = vadd.f32 %v2593_v42, %v709_v43 }
 0x5cc   :  { %v1003_v46 = vsub.f32 %v996_v35, %v1002_v44  ;;  %v2625_v44 = vld [vmem:[#allocation2 + $0x128] ss:$0 sm:$0xff] }
 0x5cd   :  { %v721_v55 = vadd.f32 %v710_v53, %v2566_v45 }
 0x5ce   :  { %v1004_v47 = vmul.f32 1.442695, %v1003_v46 }
 0x5cf   :  { %v725_v58 = vsel %vm121_vm2, %v721_v55, 0.0 }
 0x5d0   :  { %2287 = vpow2.f32 %v1004_v47 }
 0x5d2   :  { %v712_v48 = vpop.f32.mrf.mxu3 }
 0x5d3   :  { %v2596_v49 = vadd.f32 %v2593_v42, %v712_v48 }
 0x5d5   :  { %v722_v53 = vadd.f32 %v2596_v49, %v2571_v56 }
 0x5d6   :  { %v2288_v50 = vpop.eup %2287 }
 0x5d7   :  { %v1006_v54 = vsel %vm999_vm1, %v2288_v50, 0.0 }
 0x5d8   :  { %1007 = vadd.xlane.f32.xlu2 %v1006_v54  ;;  %v728_v54 = vsel %vm121_vm2, %v722_v53, 0.0 }
 0x5da   :  { %v715_v4 = vpop.f32.mrf.mxu3 }
 0x5db   :  { %v716_v11 = vadd.f32 %v2593_v42, %v715_v4 }
 0x5dd   :  { %v723_v17 = vadd.f32 %v716_v11, %v2576_v2  ;;  %v873_v2 = vld [vmem:[#allocation2 + $0x1e8] sm:$0xff] }
 0x5de   :  { %v877_v11 = vld [vmem:[#allocation2 + $0x208] sm:$0xff] }
 0x5df   :  { %v731_v62 = vsel %vm121_vm2, %v723_v17, 0.0  ;;  %1300 = vmatpush.msra.mxu0 %v877_v11 }
 0x5e0   :  { %726 = vadd.xlane.f32.xlu2 %v725_v58 }
 0x5e2   :  { %v718_v28 = vpop.f32.mrf.mxu3 }
 0x5e3   :  { %v719_v49 = vadd.f32 %v2593_v42, %v718_v28  ;;  %v875_v42 = vld [vmem:[#allocation2 + $0x1f8] sm:$0xff] }
 0x64b   :  { %v1008_v59 = vpop.xlane.xlu2 %1007 }
 0x64c   :  { %2289 = vrcp.f32 %v1008_v59  ;;  %v1020_v1 = vand.u32 2147483648, %v1008_v59  ;;  %v1018_v8 = vand.u32 2147483647, %v1008_v59  ;;  %vm1014_vm11 = vweird.f32 %v1008_v59 }
 0x64e   :  { %v1021_v10 = vor.u32 1.1754944e-38, %v1020_v1  ;;  %vm1019_vm13 = vcmp.eq.f32.partialorder %v1018_v8, 8.507059e+37 }
 0x652   :  { %v2290_v60 = vpop.eup %2289 }
 0x653   :  { %v1010_v61 = vmul.f32 %v2290_v60, %v1008_v59  ;;  %v727_v63 = vpop.xlane.xlu2 %726  ;;  %vm1015_vm10 = vweird.f32 %v2290_v60 }
 0x654   :  { %v737_v0 = vmul.f32 %v727_v63, %v2512_v30  ;;  %vm1016_vm12 = vmor %vm1014_vm11, %vm1015_vm10 }
 0x655   :  { %v1011_v52 = vsub.f32 1.0, %v1010_v61 }
 0x656   :  { %v2603_v3 = vsub.f32 %v721_v55, %v737_v0 }
 0x657   :  { %v1012_v6 = vmul.f32 %v2290_v60, %v1011_v52 }
 0x658   :  { %v745_v45 = vmul.f32 %v2603_v3, %v2603_v3 }
 0x659   :  { %v1013_v57 = vadd.f32 %v2290_v60, %v1012_v6  ;;  %v724_v6 = vadd.f32 %v719_v49, %v2581_v9 }
 0x65a   :  { %v749_v13 = vsel %vm121_vm2, %v745_v45, 0.0 }
 0x65b   :  { %v1017_v14 = vsel %vm1016_vm12, %v2290_v60, %v1013_v57  ;;  %750 = vadd.xlane.f32.xlu2 %v749_v13  ;;  %v734_v45 = vsel %vm121_vm2, %v724_v6, 0.0  ;;  %v876_v13 = vld [vmem:[#allocation2 + $0x200] sm:$0xff] }
 0x65c   :  { %v1022_v15 = vsel %vm1019_vm13, %v1021_v10, %v1017_v14  ;;  %1301 = vmatpush.msra.mxu0 %v876_v13  ;;  %v874_v14 = vld [vmem:[#allocation2 + $0x1f0] sm:$0xff] }
 0x65d   :  { %v1023_v16 = vmul.f32 %v2288_v50, %v1022_v15 }
 0x65e   :  { %1302 = vmatpush.msra.mxu0 %v875_v42 }
 0x65f   :  { %2184 = vmatmul.msk.f32.vlgmr.msrb.gmra.mxu3 %vm999_vm1, %v1023_v16 }
 0x660   :  { %1271 = vmatpush.msrb.mxu3 %v873_v2  ;;  %1303 = vmatpush.msra.mxu0 %v874_v14 }
 0x662   :  { %1272 = vmatpush.msrb.mxu3 %v872_v7 }
 0x663   :  { %732 = vadd.xlane.f32.xlu2 %v731_v62 }
 0x664   :  { %1273 = vmatpush.msrb.mxu3 %v871_v25 }
 0x666   :  { %1274 = vmatpush.msrb.mxu3 %v870_v12 }
 0x667   :  { %2187 = vmatmul.msk.f32.vlgmr.msra.gmra.mxu3 %vm221_vm3, %v2561_v20 }
 0x6ce   :  { %v751_v20 = vpop.xlane.xlu2 %750 }
 0x6cf   :  { %v761_v22 = vmul.f32 %v751_v20, %v2512_v30 }
 0x6d1   :  { %v765_v23 = vadd.f32 1e-05, %v761_v22 }
 0x6d3   :  { %2291 = vrsqrt.f32 %v765_v23  ;;  %vm775_vm15 = vweird.f32 %v765_v23 }
 0x6d6   :  { %v733_v24 = vpop.xlane.xlu2 %732 }
 0x6d7   :  { %v739_v29 = vmul.f32 %v733_v24, %v2512_v30 }
 0x6d9   :  { %v2292_v26 = vpop.eup %2291  ;;  %v2616_v27 = vsub.f32 %v723_v17, %v739_v29 }
 0x6da   :  { %v770_v33 = vmul.f32 %v2292_v26, %v765_v23  ;;  %vm776_vm14 = vweird.f32 %v2292_v26 }
 0x6db   :  { %v747_v31 = vmul.f32 %v2616_v27, %v2616_v27  ;;  %vm777_vm4 = vmor %vm775_vm15, %vm776_vm14 }
 0x6dc   :  { %v771_v32 = vmul.f32 %v2292_v26, %v770_v33 }
 0x6dd   :  { %v755_v34 = vsel %vm121_vm2, %v747_v31, 0.0 }
 0x6de   :  { %v772_v35 = vmul.f32 0.5, %v771_v32  ;;  %756 = vadd.xlane.f32.xlu2 %v755_v34 }
 0x6e0   :  { %v773_v36 = vsub.f32 1.5, %v772_v35 }
 0x6e2   :  { %v774_v37 = vmul.f32 %v2292_v26, %v773_v36  ;;  %v1044_v38 = vpop.f32.mrf.mxu3 }
 0x6e3   :  { %2185 = vmatmul.msk.f32.vlgmr.msra.gmra.mxu2 %vm121_vm2, %v1044_v38 }
 0x6e4   :  { %v778_v41 = vsel %vm777_vm4, %v2292_v26, %v774_v37 }
 0x6e5   :  { %v809_v43 = vmul.f32 %v778_v41, %v2603_v3 }
 0x6e7   :  { %v814_v46 = vmul.f32 %v2621_v40, %v809_v43 }
 0x6e9   :  { %v2629_v47 = vadd.f32 %v2625_v44, %v814_v46 }
 0x6ea   :  { %v1093_v48 = vpop.f32.mrf.mxu3 }
 0x6eb   :  { %2192 = vmatmul.msk.f32.vlgmr.msrb.gmra.mxu3 %vm121_vm2, %v2629_v47  ;;  %v1096_v50 = vsel %vm999_vm1, %v1093_v48, -inf }
 0x6ec   :  { %1097 = vmax.xlane.f32.xlu0 %v1096_v50 }
 0x6f4   :  { %729 = vadd.xlane.f32.xlu0 %v728_v54 }
 0x751   :  { %v757_v57 = vpop.xlane.xlu2 %756 }
 0x752   :  { %v763_v10 = vmul.f32 %v757_v57, %v2512_v30 }
 0x754   :  { %v767_v15 = vadd.f32 1e-05, %v763_v10 }
 0x756   :  { %vm795_vm12 = vweird.f32 %v767_v15 }
 0x75f   :  { %v1098_v55 = vpop.xlane.xlu0 %1097 }
 0x760   :  { %v1099_v58 = vsub.f32 %v1093_v48, %v1098_v55 }
 0x762   :  { %v1100_v59 = vmul.f32 1.442695, %v1099_v58 }
 0x764   :  { %2293 = vpow2.f32 %v1100_v59 }
 0x765   :  { %2295 = vrsqrt.f32 %v767_v15 }
 0x766   :  { %v1067_v1 = vpop.f32.mrf.mxu2 }
 0x767   :  { %v730_v60 = vpop.xlane.xlu0 %729  ;;  %v1166_v4 = vadd.f32 %v1067_v1, %v2515_v39 }
 0x768   :  { %v738_v61 = vmul.f32 %v730_v60, %v2512_v30 }
 0x769   :  { %v1168_v8 = vsel %vm121_vm2, %v1166_v4, 0.0 }
 0x76a   :  { %v2638_v63 = vpop.eup %2293  ;;  %v2640_v0 = vsub.f32 %v722_v53, %v738_v61 }
 0x76b   :  { %v1102_v52 = vsel %vm999_vm1, %v2638_v63, 0.0  ;;  %v2296_v16 = vpop.eup %2295 }
 0x76c   :  { %1103 = vadd.xlane.f32.xlu1 %v1102_v52  ;;  %v746_v56 = vmul.f32 %v2640_v0, %v2640_v0  ;;  %v790_v5 = vmul.f32 %v2296_v16, %v767_v15  ;;  %vm796_vm9 = vweird.f32 %v2296_v16 }
 0x76d   :  { %vm797_vm13 = vmor %vm795_vm12, %vm796_vm9 }
 0x76e   :  { %v752_v3 = vsel %vm121_vm2, %v746_v56, 0.0  ;;  %v791_v25 = vmul.f32 %v2296_v16, %v790_v5  ;;  %v2683_v5 = vld [vmem:[#allocation2 + $0x280] ss:$0 sm:$0xff] }
 0x76f   :  { %753 = vadd.xlane.f32.xlu0 %v752_v3  ;;  %v867_v3 = vld [vmem:[#allocation2 + $0x1b8] sm:$0xff] }
 0x770   :  { %v792_v32 = vmul.f32 0.5, %v791_v25  ;;  %v2686_v25 = vld [vmem:[#allocation2 + $0x288] ss:$0 sm:$0xff] }
 0x772   :  { %v793_v50 = vsub.f32 1.5, %v792_v32 }
 0x774   :  { %1169 = vadd.xlane.f32.xlu1 %v1168_v8  ;;  %v794_v55 = vmul.f32 %v2296_v16, %v793_v50 }
 0x776   :  { %v798_v61 = vsel %vm797_vm13, %v2296_v16, %v794_v55 }
 0x777   :  { %735 = vadd.xlane.f32.xlu0 %v734_v45  ;;  %v811_v1 = vmul.f32 %v798_v61, %v2616_v27 }
 0x779   :  { %v816_v56 = vmul.f32 %v2621_v40, %v811_v1 }
 0x77b   :  { %v821_v49 = vadd.f32 %v2625_v44, %v816_v56 }
 0x7df   :  { %v1104_v39 = vpop.xlane.xlu1 %1103 }
 0x7e0   :  { %2297 = vrcp.f32 %v1104_v39  ;;  %v1116_v12 = vand.u32 2147483648, %v1104_v39  ;;  %v1114_v24 = vand.u32 2147483647, %v1104_v39  ;;  %vm1110_vm6 = vweird.f32 %v1104_v39 }
 0x7e2   :  { %v754_v9 = vpop.xlane.xlu0 %753  ;;  %v1117_v34 = vor.u32 1.1754944e-38, %v1116_v12  ;;  %vm1115_vm0 = vcmp.eq.f32.partialorder %v1114_v24, 8.507059e+37  ;;  %v1276_v12 = vpop.f32.mrf.mxu3 }
 0x7e3   :  { %v762_v17 = vmul.f32 %v754_v9, %v2512_v30 }
 0x7e5   :  { %v766_v62 = vadd.f32 1e-05, %v762_v17 }
 0x7e6   :  { %v2298_v18 = vpop.eup %2297 }
 0x7e7   :  { %v1106_v21 = vmul.f32 %v2298_v18, %v1104_v39  ;;  %2299 = vrsqrt.f32 %v766_v62  ;;  %v1170_v19 = vpop.xlane.xlu1 %1169  ;;  %vm1111_vm5 = vweird.f32 %v2298_v18  ;;  %vm785_vm10 = vweird.f32 %v766_v62 }
 0x7e8   :  { %v1174_v2 = vmul.f32 %v1170_v19, %v2512_v30  ;;  %vm1112_vm7 = vmor %vm1110_vm6, %vm1111_vm5 }
 0x7e9   :  { %v1107_v7 = vsub.f32 1.0, %v1106_v21 }
 0x7ea   :  { %v2655_v20 = vsub.f32 %v1166_v4, %v1174_v2  ;;  %v736_v22 = vpop.xlane.xlu0 %735  ;;  %v866_v4 = vld [vmem:[#allocation2 + $0x1b0] sm:$0xff] }
 0x7eb   :  { %v1108_v23 = vmul.f32 %v2298_v18, %v1107_v7  ;;  %v740_v29 = vmul.f32 %v736_v22, %v2512_v30 }
 0x7ec   :  { %v1178_v26 = vmul.f32 %v2655_v20, %v2655_v20 }
 0x7ed   :  { %v2300_v28 = vpop.eup %2299  ;;  %v1109_v33 = vadd.f32 %v2298_v18, %v1108_v23  ;;  %v2660_v31 = vsub.f32 %v724_v6, %v740_v29 }
 0x7ee   :  { %v780_v35 = vmul.f32 %v2300_v28, %v766_v62  ;;  %v1180_v36 = vsel %vm121_vm2, %v1178_v26, 0.0  ;;  %vm786_vm8 = vweird.f32 %v2300_v28 }
 0x7ef   :  { %v1113_v37 = vsel %vm1112_vm7, %v2298_v18, %v1109_v33  ;;  %1181 = vadd.xlane.f32.xlu1 %v1180_v36  ;;  %v748_v38 = vmul.f32 %v2660_v31, %v2660_v31  ;;  %vm787_vm11 = vmor %vm785_vm10, %vm786_vm8 }
 0x7f0   :  { %v1118_v41 = vsel %vm1115_vm0, %v1117_v34, %v1113_v37  ;;  %v781_v43 = vmul.f32 %v2300_v28, %v780_v35  ;;  %v2706_v34 = vld [vmem:[#allocation2 + $0x218] sm:$0xff] }
 0x7f1   :  { %v758_v46 = vsel %vm121_vm2, %v748_v38, 0.0  ;;  %v1119_v48 = vmul.f32 %v2638_v63, %v1118_v41 }
 0x7f2   :  { %v782_v53 = vmul.f32 0.5, %v781_v43  ;;  %759 = vadd.xlane.f32.xlu0 %v758_v46 }
 0x7f3   :  { %2188 = vmatmul.msk.f32.vlgmr.msrb.gmra.mxu0 %vm999_vm1, %v1119_v48 }
 0x7f4   :  { %v783_v54 = vsub.f32 1.5, %v782_v53 }
 0x7f6   :  { %v784_v58 = vmul.f32 %v2300_v28, %v783_v54 }
 0x7f8   :  { %v788_v59 = vsel %vm787_vm11, %v2300_v28, %v784_v58 }
 0x7f9   :  { %v810_v60 = vmul.f32 %v788_v59, %v2640_v0  ;;  %v869_v0 = vld [vmem:[#allocation2 + $0x1c8] sm:$0xff] }
 0x7fa   :  { %1236 = vmatpush.msrb.mxu2 %v869_v0 }
 0x7fb   :  { %2196 = vmatmul.msk.f32.vlgmr.msra.gmra.mxu0 %vm121_vm2, %v2629_v47  ;;  %v815_v63 = vmul.f32 %v2621_v40, %v810_v60  ;;  %v868_v47 = vld [vmem:[#allocation2 + $0x1c0] sm:$0xff] }
 0x7fc   :  { %1237 = vmatpush.msrb.mxu2 %v868_v47 }
 0x7fd   :  { %v820_v52 = vadd.f32 %v2625_v44, %v815_v63 }
 0x7fe   :  { %1238 = vmatpush.msrb.mxu2 %v867_v3 }
 0x7ff   :  { %2193 = vmatmul.msk.f32.gmra.mxu3 %vm121_vm2, %v820_v52 }
 0x800   :  { %1239 = vmatpush.msrb.mxu2 %v866_v4 }
 0x803   :  { %2197 = vmatmul.msk.f32.gmra.mxu0 %vm121_vm2, %v820_v52 }
 0x807   :  { %2194 = vmatmul.msk.f32.gmra.mxu3 %vm121_vm2, %v821_v49 }
 0x80b   :  { %2198 = vmatmul.msk.f32.gmra.mxu0 %vm121_vm2, %v821_v49 }
 0x862   :  { %v1182_v27 = vpop.xlane.xlu1 %1181 }
 0x863   :  { %v1186_v6 = vmul.f32 %v1182_v27, %v2512_v30 }
 0x865   :  { %v1188_v8 = vadd.f32 1e-05, %v1186_v6  ;;  %v760_v45 = vpop.xlane.xlu0 %759 }
 0x866   :  { %v764_v57 = vmul.f32 %v760_v45, %v2512_v30 }
 0x867   :  { %2301 = vrsqrt.f32 %v1188_v8  ;;  %vm1196_vm14 = vweird.f32 %v1188_v8 }
 0x868   :  { %v768_v11 = vadd.f32 1e-05, %v764_v57 }
 0x86a   :  { %2303 = vrsqrt.f32 %v768_v11  ;;  %vm805_vm5 = vweird.f32 %v768_v11 }
 0x86d   :  { %v2302_v10 = vpop.eup %2301 }
 0x86e   :  { %v1191_v13 = vmul.f32 %v2302_v10, %v1188_v8  ;;  %vm1197_vm1 = vweird.f32 %v2302_v10 }
 0x86f   :  { %vm1198_vm15 = vmor %vm1196_vm14, %vm1197_vm1 }
 0x870   :  { %v2304_v42 = vpop.eup %2303  ;;  %v1192_v14 = vmul.f32 %v2302_v10, %v1191_v13  ;;  %v1140_v15 = vpop.f32.mrf.mxu0 }
 0x871   :  { %v800_v39 = vmul.f32 %v2304_v42, %v768_v11  ;;  %2189 = vmatmul.msk.f32.vlgmr.msrb.gmra.mxu1 %vm121_vm2, %v1140_v15  ;;  %vm806_vm4 = vweird.f32 %v2304_v42 }
 0x872   :  { %v1193_v9 = vmul.f32 0.5, %v1192_v14  ;;  %vm807_vm6 = vmor %vm805_vm5, %vm806_vm4 }
 0x873   :  { %v801_v16 = vmul.f32 %v2304_v42, %v800_v39 }
 0x874   :  { %v1194_v17 = vsub.f32 1.5, %v1193_v9 }
 0x875   :  { %v802_v62 = vmul.f32 0.5, %v801_v16 }
 0x876   :  { %v1195_v18 = vmul.f32 %v2302_v10, %v1194_v17 }
 0x877   :  { %v803_v21 = vsub.f32 1.5, %v802_v62 }
 0x878   :  { %v1199_v19 = vsel %vm1198_vm15, %v2302_v10, %v1195_v18  ;;  %v1305_v29 = vpop.f32.mrf.mxu0 }
 0x879   :  { %v1210_v2 = vmul.f32 %v1199_v19, %v2655_v20  ;;  %v804_v7 = vmul.f32 %v2304_v42, %v803_v21 }
 0x87b   :  { %v1213_v22 = vmul.f32 %v2683_v5, %v1210_v2  ;;  %v808_v23 = vsel %vm807_vm6, %v2304_v42, %v804_v7 }
 0x87c   :  { %v812_v24 = vmul.f32 %v808_v23, %v2660_v31  ;;  %v2701_v31 = vld [vmem:[#allocation2 + $0x228] sm:$0xff] }
 0x87d   :  { %v2691_v26 = vadd.f32 %v2686_v25, %v1213_v22  ;;  %1408 = vmatpush.msra.mxu2 %v2701_v31 }
 0x87e   :  { %v817_v28 = vmul.f32 %v2621_v40, %v812_v24  ;;  %v2703_v40 = vld [vmem:[#allocation2 + $0x220] sm:$0xff] }
 0x87f   :  { %2190 = vmatmul.msk.f32.vlgmr.msrb.gmra.mxu2 %vm121_vm2, %v2691_v26 }
 0x880   :  { %v822_v20 = vadd.f32 %v2625_v44, %v817_v28  ;;  %v1308_v32 = vpop.f32.mrf.mxu0  ;;  %1409 = vmatpush.msra.mxu2 %v2703_v40  ;;  %v2710_v44 = vld [vmem:[#allocation2 + $0x210] sm:$0xff] }
 0x882   :  { %v1279_v33 = vpop.f32.mrf.mxu3  ;;  %2195 = vmatmul.msk.f32.gmra.mxu3 %vm121_vm2, %v822_v20  ;;  %2199 = vmatmul.msk.f32.gmra.mxu0 %vm121_vm2, %v822_v20 }
 0x883   :  { %2200 = vmatpush.xpose.msk.msra.mxu1 %vm221_vm3, %v1279_v33  ;;  %1410 = vmatpush.msra.mxu2 %v2706_v34 }
 0x885   :  { %1411 = vmatpush.msra.mxu2 %v2710_v44 }
 0x887   :  { %2201 = vmatpush.xpose.msk.msra.mxu1 %vm221_vm3, %v1276_v12 }
 0x888   :  { %v1311_v38 = vpop.f32.mrf.mxu0 }
 0x88a   :  { %v1282_v41 = vpop.f32.mrf.mxu3 }
 0x88b   :  { %1387 = vmatpush.msrb.mxu1 %v1308_v32 }
 0x88d   :  { %1388 = vmatpush.msrb.mxu1 %v1305_v29 }
 0x8ee   :  { %v1163_v35 = vpop.f32.mrf.mxu1 }
 0x8ef   :  { %v1167_v36 = vadd.f32 %v1163_v35, %v2527_v51 }
 0x8f1   :  { %v1171_v37 = vsel %vm121_vm2, %v1167_v36, 0.0 }
 0x8f2   :  { %1172 = vadd.xlane.f32.xlu1 %v1171_v37 }
 0x8ff   :  { %v1314_v43 = vpop.f32.mrf.mxu0 }
 0x900   :  { %1486 = vmatpush.msrb.mxu2 %v1314_v43 }
 0x902   :  { %v1241_v46 = vpop.f32.mrf.mxu2  ;;  %1487 = vmatpush.msrb.mxu2 %v1311_v38 }
 0x903   :  { %2202 = vmatmul.msk.f32.vlgmr.msra.gmra.mxu1 %vm221_vm3, %v1241_v46 }
 0x905   :  { %v1285_v48 = vpop.f32.mrf.mxu3 }
 0x906   :  { %2205 = vmatpush.xpose.msk.msra.mxu1 %vm221_vm3, %v1285_v48 }
 0x90a   :  { %2206 = vmatpush.xpose.msk.msra.mxu1 %vm221_vm3, %v1282_v41 }
 0x965   :  { %v1173_v50 = vpop.xlane.xlu1 %1172 }
 0x966   :  { %v1175_v53 = vmul.f32 %v1173_v50, %v2512_v30 }
 0x968   :  { %v1177_v51 = vsub.f32 %v1167_v36, %v1175_v53 }
 0x96a   :  { %v1179_v54 = vmul.f32 %v1177_v51, %v1177_v51 }
 0x96c   :  { %v1183_v55 = vsel %vm121_vm2, %v1179_v54, 0.0  ;;  %v885_v54 = vld [vmem:[#allocation2 + $0x248] sm:$0xff] }
 0x96d   :  { %1184 = vadd.xlane.f32.xlu1 %v1183_v55  ;;  %v884_v55 = vld [vmem:[#allocation2 + $0x240] sm:$0xff] }
 0x980   :  { %v1343_v58 = vpop.f32.mrf.mxu1 }
 0x981   :  { %v1346_v59 = vsel %vm221_vm3, %v1343_v58, -inf }
 0x982   :  { %1347 = vmax.xlane.f32.xlu2 %v1346_v59  ;;  %v882_v59 = vld [vmem:[#allocation2 + $0x230] sm:$0xff] }
 0x9e0   :  { %v1185_v60 = vpop.xlane.xlu1 %1184 }
 0x9e1   :  { %v1187_v61 = vmul.f32 %v1185_v60, %v2512_v30 }
 0x9e3   :  { %v1189_v63 = vadd.f32 1e-05, %v1187_v61 }
 0x9e5   :  { %2305 = vrsqrt.f32 %v1189_v63  ;;  %vm1206_vm0 = vweird.f32 %v1189_v63 }
 0x9eb   :  { %v2306_v52 = vpop.eup %2305 }
 0x9ec   :  { %v1201_v1 = vmul.f32 %v2306_v52, %v1189_v63  ;;  %vm1207_vm7 = vweird.f32 %v2306_v52 }
 0x9ed   :  { %vm1208_vm8 = vmor %vm1206_vm0, %vm1207_vm7 }
 0x9ee   :  { %v1202_v56 = vmul.f32 %v2306_v52, %v1201_v1 }
 0x9f0   :  { %v1203_v49 = vmul.f32 0.5, %v1202_v56 }
 0x9f2   :  { %v1204_v0 = vsub.f32 1.5, %v1203_v49 }
 0x9f4   :  { %v1205_v47 = vmul.f32 %v2306_v52, %v1204_v0 }
 0x9f5   :  { %v1348_v3 = vpop.xlane.xlu2 %1347 }
 0x9f6   :  { %v1209_v4 = vsel %vm1208_vm8, %v2306_v52, %v1205_v47  ;;  %v1349_v27 = vsub.f32 %v1343_v58, %v1348_v3  ;;  %v883_v58 = vld [vmem:[#allocation2 + $0x238] sm:$0xff]  ;;  %v2247_v3 = vld [vmem:[#allocation2 + $0x290] ss:$0 sm:$0xff] }
 0x9f7   :  { %v1211_v6 = vmul.f32 %v1209_v4, %v1177_v51 }
 0x9f8   :  { %v1350_v8 = vmul.f32 1.442695, %v1349_v27 }
 0x9f9   :  { %v1214_v45 = vmul.f32 %v2683_v5, %v1211_v6  ;;  %v2248_v6 = vld [vmem:[#allocation2 + $0x298] ss:$0 sm:$0xff] }
 0x9fa   :  { %2307 = vpow2.f32 %v1350_v8 }
 0x9fb   :  { %v2724_v57 = vadd.f32 %v2686_v25, %v1214_v45 }
 0x9fd   :  { %2191 = vmatmul.msk.f32.gmra.mxu2 %vm121_vm2, %v2724_v57 }
 0xa00   :  { %v2308_v11 = vpop.eup %2307 }
 0xa01   :  { %v1352_v10 = vsel %vm221_vm3, %v2308_v11, 0.0 }
 0xa02   :  { %1353 = vadd.xlane.f32.xlu0 %v1352_v10  ;;  %v890_v10 = vld [vmem:[#allocation2 + $0x270] sm:$0xff] }
 0xa03   :  { %1628 = vmatpush.msra.mxu3 %v890_v10  ;;  %v2800_v10 = vld [vmem:[#allocation2 + $0x2f8] sm:$0xff] }
 0xa75   :  { %v1354_v13 = vpop.xlane.xlu0 %1353 }
 0xa76   :  { %2309 = vrcp.f32 %v1354_v13  ;;  %v1366_v39 = vand.u32 2147483648, %v1354_v13  ;;  %v1364_v16 = vand.u32 2147483647, %v1354_v13  ;;  %vm1360_vm10 = vweird.f32 %v1354_v13 }
 0xa78   :  { %v1367_v62 = vor.u32 1.1754944e-38, %v1366_v39  ;;  %vm1365_vm12 = vcmp.eq.f32.partialorder %v1364_v16, 8.507059e+37 }
 0xa7c   :  { %v2310_v42 = vpop.eup %2309 }
 0xa7d   :  { %v1356_v14 = vmul.f32 %v2310_v42, %v1354_v13  ;;  %vm1361_vm9 = vweird.f32 %v2310_v42  ;;  %v889_v13 = vld [vmem:[#allocation2 + $0x268] sm:$0xff] }
 0xa7e   :  { %vm1362_vm11 = vmor %vm1360_vm10, %vm1361_vm9  ;;  %1629 = vmatpush.msra.mxu3 %v889_v13 }
 0xa7f   :  { %v1357_v15 = vsub.f32 1.0, %v1356_v14  ;;  %v887_v14 = vld [vmem:[#allocation2 + $0x258] sm:$0xff] }
 0xa80   :  { %v1244_v19 = vpop.f32.mrf.mxu2 }
 0xa81   :  { %v1358_v9 = vmul.f32 %v2310_v42, %v1357_v15 }
 0xa83   :  { %v1359_v17 = vadd.f32 %v2310_v42, %v1358_v9  ;;  %v2747_v9 = vld [vmem:[#allocation2 + $0x250] ss:$0 sm:$0xff] }
 0xa85   :  { %v1363_v18 = vsel %vm1362_vm11, %v2310_v42, %v1359_v17  ;;  %v888_v42 = vld [vmem:[#allocation2 + $0x260] sm:$0xff] }
 0xa86   :  { %v1368_v5 = vsel %vm1365_vm12, %v1367_v62, %v1363_v18  ;;  %1630 = vmatpush.msra.mxu3 %v888_v42  ;;  %v2805_v42 = vld [vmem:[#allocation2 + $0x320] sm:$0xff] }
 0xa87   :  { %v1369_v21 = vmul.f32 %v2308_v11, %v1368_v5 }
 0xa88   :  { %1631 = vmatpush.msra.mxu3 %v887_v14  ;;  %v2807_v14 = vld [vmem:[#allocation2 + $0x2f0] sm:$0xff] }
 0xa89   :  { %2203 = vmatmul.msk.f32.vlgmr.msrb.gmra.mxu1 %vm221_vm3, %v1369_v21 }
 0xa8a   :  { %1507 = vmatpush.msrb.mxu1 %v2701_v31 }
 0xa8c   :  { %1508 = vmatpush.msrb.mxu1 %v2703_v40 }
 0xa8e   :  { %1509 = vmatpush.msrb.mxu1 %v2706_v34 }
 0xa90   :  { %1510 = vmatpush.msrb.mxu1 %v2710_v44 }
 0xa91   :  { %2207 = vmatmul.msk.f32.vlgmr.msra.gmra.mxu1 %vm221_vm3, %v1244_v19 }
 0xb06   :  { %v1390_v2 = vpop.f32.mrf.mxu1 }
 0xb07   :  { %2204 = vmatmul.msk.f32.vlgmr.msra.gmra.mxu2 %vm121_vm2, %v1390_v2 }
 0xb08   :  { %1586 = vmatpush.msra.mxu2 %v885_v54  ;;  %v1694_v54 = vld [vmem:[#allocation2 + $0x2c8] sm:$0xff] }
 0xb09   :  { %1739 = vmatpush.msrb.mxu0 %v1694_v54 }
 0xb0a   :  { %1587 = vmatpush.msra.mxu2 %v884_v55  ;;  %v1693_v55 = vld [vmem:[#allocation2 + $0x2c0] sm:$0xff] }
 0xb0b   :  { %1740 = vmatpush.msrb.mxu0 %v1693_v55 }
 0xb0c   :  { %1588 = vmatpush.msra.mxu2 %v883_v58  ;;  %v1698_v58 = vld [vmem:[#allocation2 + $0x2e8] sm:$0xff] }
 0xb0d   :  { %1763 = vmatpush.msra.mxu1 %v1698_v58 }
 0xb0e   :  { %v1442_v7 = vpop.f32.mrf.mxu1  ;;  %1589 = vmatpush.msra.mxu2 %v882_v59  ;;  %v2769_v59 = vld [vmem:[#allocation2 + $0x348] sm:$0xff] }
 0xb0f   :  { %v1445_v25 = vsel %vm221_vm3, %v1442_v7, -inf }
 0xb10   :  { %1446 = vmax.xlane.f32.xlu1 %v1445_v25 }
 0xb83   :  { %v1447_v12 = vpop.xlane.xlu1 %1446 }
 0xb84   :  { %v1448_v22 = vsub.f32 %v1442_v7, %v1447_v12 }
 0xb86   :  { %v1449_v23 = vmul.f32 1.442695, %v1448_v22 }
 0xb88   :  { %2311 = vpow2.f32 %v1449_v23  ;;  %v2754_v23 = vld [vmem:[#allocation2 + $0x278] ss:$0 sm:$0xff] }
 0xb8a   :  { %v1413_v24 = vpop.f32.mrf.mxu2 }
 0xb8b   :  { %v1515_v29 = vadd.f32 %v1413_v24, %v2691_v26 }
 0xb8d   :  { %v1517_v28 = vsel %vm121_vm2, %v1515_v29, 0.0 }
 0xb8e   :  { %v2312_v20 = vpop.eup %2311  ;;  %1518 = vadd.xlane.f32.xlu0 %v1517_v28 }
 0xb8f   :  { %v1451_v33 = vsel %vm221_vm3, %v2312_v20, 0.0 }
 0xb90   :  { %1452 = vadd.xlane.f32.xlu2 %v1451_v33 }
 0xc01   :  { %v1519_v32 = vpop.xlane.xlu0 %1518 }
 0xc02   :  { %v1523_v31 = vmul.f32 %v1519_v32, %v2512_v30 }
 0xc03   :  { %v1453_v40 = vpop.xlane.xlu2 %1452 }
 0xc04   :  { %v1525_v34 = vsub.f32 %v1515_v29, %v1523_v31  ;;  %2313 = vrcp.f32 %v1453_v40  ;;  %v1465_v38 = vand.u32 2147483648, %v1453_v40  ;;  %v1463_v43 = vand.u32 2147483647, %v1453_v40 }
 0xc05   :  { %vm1459_vm1 = vweird.f32 %v1453_v40 }
 0xc06   :  { %v1527_v44 = vmul.f32 %v1525_v34, %v1525_v34  ;;  %v1466_v48 = vor.u32 1.1754944e-38, %v1465_v38  ;;  %vm1464_vm15 = vcmp.eq.f32.partialorder %v1463_v43, 8.507059e+37 }
 0xc08   :  { %v1529_v35 = vsel %vm121_vm2, %v1527_v44, 0.0 }
 0xc09   :  { %1530 = vadd.xlane.f32.xlu2 %v1529_v35 }
 0xc0a   :  { %v2314_v36 = vpop.eup %2313 }
 0xc0b   :  { %v1455_v37 = vmul.f32 %v2314_v36, %v1453_v40  ;;  %vm1460_vm13 = vweird.f32 %v2314_v36 }
 0xc0c   :  { %vm1461_vm14 = vmor %vm1459_vm1, %vm1460_vm13  ;;  %vm1916_vm13 = vcmask 24576  }
 0xc0d   :  { %v1456_v26 = vsub.f32 1.0, %v1455_v37 }
 0xc0f   :  { %v1457_v41 = vmul.f32 %v2314_v36, %v1456_v26 }
 0xc11   :  { %v1458_v46 = vadd.f32 %v2314_v36, %v1457_v41 }
 0xc13   :  { %v1462_v50 = vsel %vm1461_vm14, %v2314_v36, %v1458_v46 }
 0xc14   :  { %v1467_v53 = vsel %vm1464_vm15, %v1466_v48, %v1462_v50 }
 0xc15   :  { %v1468_v51 = vmul.f32 %v2312_v20, %v1467_v53 }
 0xc17   :  { %2208 = vmatmul.msk.f32.vlgmr.msrb.gmra.mxu2 %vm221_vm3, %v1468_v51 }
 0xc18   :  { %1835 = vmatpush.msrb.mxu2 %v2769_v59 }
 0xc7c   :  { %v1531_v60 = vpop.xlane.xlu2 %1530 }
 0xc7d   :  { %v1535_v61 = vmul.f32 %v1531_v60, %v2512_v30  ;;  %v2771_v60 = vld [vmem:[#allocation2 + $0x368] sm:$0xff] }
 0xc7e   :  { %1859 = vmatpush.msrb.mxu3 %v2771_v60 }
 0xc7f   :  { %v1537_v63 = vadd.f32 1e-05, %v1535_v61  ;;  %v1692_v61 = vld [vmem:[#allocation2 + $0x2b8] sm:$0xff] }
 0xc80   :  { %1741 = vmatpush.msrb.mxu0 %v1692_v61 }
 0xc81   :  { %2315 = vrsqrt.f32 %v1537_v63  ;;  %vm1545_vm3 = vweird.f32 %v1537_v63 }
 0xc87   :  { %v2316_v52 = vpop.eup %2315 }
 0xc88   :  { %v1540_v1 = vmul.f32 %v2316_v52, %v1537_v63  ;;  %vm1546_vm4 = vweird.f32 %v2316_v52  ;;  %v1697_v63 = vld [vmem:[#allocation2 + $0x2e0] sm:$0xff] }
 0xc89   :  { %vm1547_vm5 = vmor %vm1545_vm3, %vm1546_vm4  ;;  %1764 = vmatpush.msra.mxu1 %v1697_v63 }
 0xc8a   :  { %v1541_v56 = vmul.f32 %v2316_v52, %v1540_v1  ;;  %v2777_v1 = vld [vmem:[#allocation2 + $0x360] sm:$0xff] }
 0xc8b   :  { %1860 = vmatpush.msrb.mxu3 %v2777_v1 }
 0xc8c   :  { %v1542_v49 = vmul.f32 0.5, %v1541_v56  ;;  %v1691_v56 = vld [vmem:[#allocation2 + $0x2b0] sm:$0xff] }
 0xc8d   :  { %1742 = vmatpush.msrb.mxu0 %v1691_v56 }
 0xc8e   :  { %v1543_v0 = vsub.f32 1.5, %v1542_v49  ;;  %v1696_v49 = vld [vmem:[#allocation2 + $0x2d8] sm:$0xff] }
 0xc8f   :  { %1765 = vmatpush.msra.mxu1 %v1696_v49 }
 0xc90   :  { %v1544_v47 = vmul.f32 %v2316_v52, %v1543_v0  ;;  %v2781_v0 = vld [vmem:[#allocation2 + $0x338] sm:$0xff] }
 0xc92   :  { %v1548_v4 = vsel %vm1547_vm5, %v2316_v52, %v1544_v47  ;;  %v2775_v52 = vld [vmem:[#allocation2 + $0x340] sm:$0xff]  ;;  %v2783_v47 = vld [vmem:[#allocation2 + $0x358] sm:$0xff] }
 0xc93   :  { %v1559_v27 = vmul.f32 %v1548_v4, %v1525_v34  ;;  %1836 = vmatpush.msrb.mxu2 %v2775_v52  ;;  %v2785_v4 = vld [vmem:[#allocation2 + $0x308] sm:$0xff]  ;;  %1861 = vmatpush.msrb.mxu3 %v2783_v47 }
 0xc94   :  { %1787 = vmatpush.msra.mxu0 %v2785_v4 }
 0xc95   :  { %v1562_v8 = vmul.f32 %v2247_v3, %v1559_v27  ;;  %v2787_v27 = vld [vmem:[#allocation2 + $0x330] sm:$0xff]  ;;  %1837 = vmatpush.msrb.mxu2 %v2781_v0 }
 0xc97   :  { %v1565_v45 = vadd.f32 %v2248_v6, %v1562_v8  ;;  %1838 = vmatpush.msrb.mxu2 %v2787_v27 }
 0xc99   :  { %2210 = vmatmul.msk.f32.vlgmr.msra.gmra.mxu2 %vm121_vm2, %v1565_v45 }
 0xc9a   :  { %v1489_v11 = vpop.f32.mrf.mxu2  ;;  %1933 = vmatpush.msra.mxu2 %v1694_v54 }
 0xc9b   :  { %2209 = vmatmul.msk.f32.vlgmr.msrb.gmra.mxu1 %vm121_vm2, %v1489_v11  ;;  %v2798_v11 = vld [vmem:[#allocation2 + $0x328] sm:$0xff] }
 0xc9c   :  { %1934 = vmatpush.msra.mxu2 %v1693_v55  ;;  %v1723_v55 = vld [vmem:[#allocation2 + $0x3b0] sm:$0x1] }
 0xc9e   :  { %1935 = vmatpush.msra.mxu2 %v1692_v61 }
 0xca0   :  { %1936 = vmatpush.msra.mxu2 %v1691_v56 }
 0xd18   :  { %v1512_v15 = vpop.f32.mrf.mxu1 }
 0xd19   :  { %v1516_v39 = vadd.f32 %v1512_v15, %v2724_v57  ;;  %v2809_v15 = vld [vmem:[#allocation2 + $0x318] sm:$0xff] }
 0xd1b   :  { %v1520_v16 = vsel %vm121_vm2, %v1516_v39, 0.0 }
 0xd1c   :  { %v1591_v17 = vpop.f32.mrf.mxu2  ;;  %1521 = vadd.xlane.f32.xlu1 %v1520_v16  ;;  %v2815_v16 = vld [vmem:[#allocation2 + $0x310] sm:$0xff] }
 0xd1d   :  { %v1592_v62 = vadd.f32 %v2747_v9, %v1591_v17 }
 0xd1f   :  { %v1599_v18 = vmin.f32 %v1592_v62, 0.0  ;;  %vm1597_vm6 = vcmp.gt.f32.partialorder %v1592_v62, 0.0 }
 0xd21   :  { %v1601_v5 = vmul.f32 1.442695, %v1599_v18 }
 0xd23   :  { %2317 = vpow2.f32 %v1601_v5 }
 0xd29   :  { %v2318_v21 = vpop.eup %2317 }
 0xd2a   :  { %v2212_v19 = vadd.f32 -1.0, %v2318_v21 }
 0xd2c   :  { %v1607_v2 = vsel %vm1597_vm6, %v1592_v62, %v2212_v19 }
 0xd2d   :  { %2214 = vmatmul.msk.f32.vlgmr.msra.gmra.mxu3 %vm121_vm2, %v1607_v2 }
 0xd8f   :  { %v1522_v7 = vpop.xlane.xlu1 %1521 }
 0xd90   :  { %v1524_v57 = vmul.f32 %v1522_v7, %v2512_v30 }
 0xd92   :  { %v1526_v25 = vsub.f32 %v1516_v39, %v1524_v57 }
 0xd94   :  { %v1528_v12 = vmul.f32 %v1526_v25, %v1526_v25 }
 0xd96   :  { %v1532_v22 = vsel %vm121_vm2, %v1528_v12, 0.0 }
 0xd97   :  { %1533 = vadd.xlane.f32.xlu0 %v1532_v22 }
 0xdb0   :  { %v1633_v24 = vpop.f32.mrf.mxu3 }
 0xdb1   :  { %v1634_v29 = vadd.f32 %v2754_v23, %v1633_v24  ;;  %v2819_v24 = vld [vmem:[#allocation2 + $0x2a0] ss:$0 sm:$0xff] }
 0xdb3   :  { %v1639_v28 = vadd.f32 %v1634_v29, %v1565_v45  ;;  %v2796_v45 = vld [vmem:[#allocation2 + $0x300] sm:$0xff] }
 0xdb4   :  { %1788 = vmatpush.msra.mxu0 %v2796_v45 }
 0xdb5   :  { %v1641_v20 = vsel %vm121_vm2, %v1639_v28, 0.0 }
 0xdb6   :  { %1642 = vadd.xlane.f32.xlu1 %v1641_v20  ;;  %1789 = vmatpush.msra.mxu0 %v2800_v10 }
 0xdb8   :  { %1790 = vmatpush.msra.mxu0 %v2807_v14 }
 0xe0a   :  { %v1534_v33 = vpop.xlane.xlu0 %1533 }
 0xe0b   :  { %v1536_v32 = vmul.f32 %v1534_v33, %v2512_v30 }
 0xe0d   :  { %v1538_v31 = vadd.f32 1e-05, %v1536_v32 }
 0xe0f   :  { %2319 = vrsqrt.f32 %v1538_v31  ;;  %vm1555_vm0 = vweird.f32 %v1538_v31 }
 0xe15   :  { %v2320_v40 = vpop.eup %2319 }
 0xe16   :  { %v1550_v34 = vmul.f32 %v2320_v40, %v1538_v31  ;;  %vm1556_vm7 = vweird.f32 %v2320_v40  ;;  %v1718_v31 = vld [vmem:[#allocation2 + $0x388] sm:$0xff] }
 0xe17   :  { %vm1557_vm8 = vmor %vm1555_vm0, %vm1556_vm7 }
 0xe18   :  { %v1551_v44 = vmul.f32 %v2320_v40, %v1550_v34 }
 0xe1a   :  { %v1552_v35 = vmul.f32 0.5, %v1551_v44 }
 0xe1c   :  { %v1553_v36 = vsub.f32 1.5, %v1552_v35  ;;  %v1717_v35 = vld [vmem:[#allocation2 + $0x380] sm:$0xff] }
 0xe1e   :  { %v1554_v37 = vmul.f32 %v2320_v40, %v1553_v36  ;;  %v1722_v36 = vld [vmem:[#allocation2 + $0x3a8] sm:$0xff] }
 0xe20   :  { %v1558_v26 = vsel %vm1557_vm8, %v2320_v40, %v1554_v37  ;;  %v1716_v37 = vld [vmem:[#allocation2 + $0x378] sm:$0xff] }
 0xe21   :  { %v1560_v38 = vmul.f32 %v1558_v26, %v1526_v25  ;;  %v1721_v26 = vld [vmem:[#allocation2 + $0x3a0] sm:$0xff] }
 0xe23   :  { %v1563_v41 = vmul.f32 %v2247_v3, %v1560_v38  ;;  %v1695_v3 = vld [vmem:[#allocation2 + $0x2d0] sm:$0xff] }
 0xe24   :  { %1766 = vmatpush.msra.mxu1 %v1695_v3  ;;  %v1715_v38 = vld [vmem:[#allocation2 + $0x370] sm:$0xff] }
 0xe25   :  { %v2759_v43 = vadd.f32 %v2248_v6, %v1563_v41  ;;  %v2791_v6 = vld [vmem:[#allocation2 + $0x350] sm:$0xff]  ;;  %v1720_v41 = vld [vmem:[#allocation2 + $0x398] sm:$0xff] }
 0xe26   :  { %1862 = vmatpush.msrb.mxu3 %v2791_v6  ;;  %1811 = vmatpush.msrb.mxu1 %v2798_v11 }
 0xe27   :  { %2211 = vmatmul.msk.f32.gmra.mxu2 %vm121_vm2, %v2759_v43 }
 0xe28   :  { %1957 = vmatpush.msra.mxu3 %v1698_v58  ;;  %1812 = vmatpush.msrb.mxu1 %v2805_v42 }
 0xe29   :  { %v1643_v46 = vpop.xlane.xlu1 %1642 }
 0xe2a   :  { %v1647_v48 = vmul.f32 %v1643_v46, %v2512_v30  ;;  %1958 = vmatpush.msra.mxu3 %v1697_v63  ;;  %1813 = vmatpush.msrb.mxu1 %v2809_v15 }
 0xe2c   :  { %v2764_v50 = vsub.f32 %v1639_v28, %v1647_v48  ;;  %1959 = vmatpush.msra.mxu3 %v1696_v49  ;;  %1814 = vmatpush.msrb.mxu1 %v2815_v16  ;;  %v2821_v28 = vld [vmem:[#allocation2 + $0x2a8] ss:$0 sm:$0xff] }
 0xe2e   :  { %v1651_v53 = vmul.f32 %v2764_v50, %v2764_v50  ;;  %1960 = vmatpush.msra.mxu3 %v1695_v3 }
 0xe30   :  { %v1653_v51 = vsel %vm121_vm2, %v1651_v53, 0.0 }
 0xe31   :  { %1654 = vadd.xlane.f32.xlu0 %v1653_v51 }
 0xea4   :  { %v1655_v8 = vpop.xlane.xlu0 %1654 }
 0xea5   :  { %v1659_v13 = vmul.f32 %v1655_v8, %v2512_v30 }
 0xea7   :  { %v1661_v39 = vadd.f32 1e-05, %v1659_v13 }
 0xea9   :  { %2321 = vrsqrt.f32 %v1661_v39  ;;  %vm1669_vm10 = vweird.f32 %v1661_v39 }
 0xeaa   :  { %v1594_v17 = vpop.f32.mrf.mxu2 }
 0xeab   :  { %v1595_v62 = vadd.f32 %v2747_v9, %v1594_v17 }
 0xead   :  { %v1600_v18 = vmin.f32 %v1595_v62, 0.0  ;;  %vm1598_vm12 = vcmp.gt.f32.partialorder %v1595_v62, 0.0 }
 0xeaf   :  { %v2322_v5 = vpop.eup %2321  ;;  %v1603_v21 = vmul.f32 1.442695, %v1600_v18 }
 0xeb0   :  { %v1664_v19 = vmul.f32 %v2322_v5, %v1661_v39  ;;  %vm1670_vm9 = vweird.f32 %v2322_v5 }
 0xeb1   :  { %2323 = vpow2.f32 %v1603_v21  ;;  %vm1671_vm11 = vmor %vm1669_vm10, %vm1670_vm9 }
 0xeb2   :  { %v1665_v2 = vmul.f32 %v2322_v5, %v1664_v19 }
 0xeb4   :  { %v1666_v7 = vmul.f32 0.5, %v1665_v2 }
 0xeb6   :  { %v1667_v57 = vsub.f32 1.5, %v1666_v7 }
 0xeb7   :  { %v2324_v25 = vpop.eup %2323 }
 0xeb8   :  { %v1668_v12 = vmul.f32 %v2322_v5, %v1667_v57  ;;  %v2213_v22 = vadd.f32 -1.0, %v2324_v25 }
 0xeba   :  { %v1672_v9 = vsel %vm1671_vm11, %v2322_v5, %v1668_v12  ;;  %v1608_v29 = vsel %vm1598_vm12, %v1595_v62, %v2213_v22 }
 0xebb   :  { %v1683_v20 = vmul.f32 %v1672_v9, %v2764_v50  ;;  %2215 = vmatmul.msk.f32.gmra.mxu3 %vm121_vm2, %v1608_v29  ;;  %v1719_v50 = vld [vmem:[#allocation2 + $0x390] sm:$0xff] }
 0xebd   :  { %v1686_v33 = vmul.f32 %v2819_v24, %v1683_v20 }
 0xebf   :  { %v1689_v32 = vadd.f32 %v2821_v28, %v1686_v33 }
 0xec1   :  { %2216 = vmatmul.msk.f32.vlgmr.msrb.gmra.mxu0 %vm121_vm2, %v1689_v32  ;;  %v1748_v40 = vrot.slane %v1689_v32, 1  ;;  %v1820_v34 = vrot.slane %v1689_v32, 4  ;;  %v1844_v44 = vrot.slane %v1689_v32, 5  ;;  %v1772_v46 = vrot.slane %v1689_v32, 2 }
 0xec2   :  { %1883 = vmatpush.msrb.mxu0 %v1718_v31  ;;  %v1796_v48 = vrot.slane %v1689_v32, 3  ;;  %v1868_v53 = vrot.slane %v1689_v32, 6  ;;  %v1892_v51 = vrot.slane %v1689_v32, 7 }
 0xec3   :  { %2217 = vmatmul.msk.f32.vlgmr.msra.gmra.mxu1 %vm121_vm2, %v1748_v40  ;;  %2220 = vmatmul.msk.f32.vlgmr.msrb.gmra.mxu2 %vm121_vm2, %v1820_v34 }
 0xec4   :  { %2221 = vmatmul.msk.f32.vlgmr.msrb.gmra.mxu3 %vm121_vm2, %v1844_v44  ;;  %1884 = vmatpush.msrb.mxu0 %v1717_v35 }
 0xec5   :  { %1907 = vmatpush.msra.mxu1 %v1722_v36  ;;  %2029 = vmatpush.msrb.mxu2 %v2769_v59 }
 0xec6   :  { %1885 = vmatpush.msrb.mxu0 %v1716_v37  ;;  %2053 = vmatpush.msrb.mxu3 %v2771_v60 }
 0xec7   :  { %1908 = vmatpush.msra.mxu1 %v1721_v26  ;;  %2030 = vmatpush.msrb.mxu2 %v2775_v52 }
 0xec8   :  { %1886 = vmatpush.msrb.mxu0 %v1715_v38  ;;  %2054 = vmatpush.msrb.mxu3 %v2777_v1 }
 0xec9   :  { %2218 = vmatmul.msk.f32.vlgmr.msra.gmra.mxu0 %vm121_vm2, %v1772_v46  ;;  %1909 = vmatpush.msra.mxu1 %v1720_v41 }
 0xeca   :  { %1981 = vmatpush.msra.mxu0 %v2785_v4  ;;  %2031 = vmatpush.msrb.mxu2 %v2781_v0 }
 0xecb   :  { %2219 = vmatmul.msk.f32.vlgmr.msrb.gmra.mxu1 %vm121_vm2, %v1796_v48  ;;  %2055 = vmatpush.msrb.mxu3 %v2783_v47 }
 0xecc   :  { %1910 = vmatpush.msra.mxu1 %v1719_v50  ;;  %1982 = vmatpush.msra.mxu0 %v2796_v45 }
 0xecd   :  { %2032 = vmatpush.msrb.mxu2 %v2787_v27  ;;  %2056 = vmatpush.msrb.mxu3 %v2791_v6 }
 0xece   :  { %2005 = vmatpush.msrb.mxu1 %v2798_v11  ;;  %1983 = vmatpush.msra.mxu0 %v2800_v10 }
 0xed0   :  { %2006 = vmatpush.msrb.mxu1 %v2805_v42  ;;  %1984 = vmatpush.msra.mxu0 %v2807_v14 }
 0xed1   :  { %2222 = vmatmul.msk.f32.vlgmr.msrb.gmra.mxu0 %vm121_vm2, %v1868_v53 }
 0xed2   :  { %2007 = vmatpush.msrb.mxu1 %v2809_v15  ;;  %2077 = vmatpush.msrb.mxu0 %v1718_v31 }
 0xed3   :  { %2223 = vmatmul.msk.f32.vlgmr.msra.gmra.mxu1 %vm121_vm2, %v1892_v51 }
 0xed4   :  { %2008 = vmatpush.msrb.mxu1 %v2815_v16  ;;  %2078 = vmatpush.msrb.mxu0 %v1717_v35 }
 0xed6   :  { %2101 = vmatpush.msra.mxu1 %v1722_v36  ;;  %2079 = vmatpush.msrb.mxu0 %v1716_v37 }
 0xed8   :  { %2102 = vmatpush.msra.mxu1 %v1721_v26  ;;  %2080 = vmatpush.msrb.mxu0 %v1715_v38 }
 0xeda   :  { %2103 = vmatpush.msra.mxu1 %v1720_v41 }
 0xedc   :  { %2104 = vmatpush.msra.mxu1 %v1719_v50 }
 0xf3e   :  { %v1636_v54 = vpop.f32.mrf.mxu3  ;;  %v1744_v58 = vpop.f32.mrf.mxu0 }
 0xf3f   :  { %v1637_v59 = vadd.f32 %v2754_v23, %v1636_v54  ;;  %v1747_v61 = vadd.f32 %v1744_v58, %v1723_v55 }
 0xf40   :  { %v1768_v60 = vpop.f32.mrf.mxu1 }
 0xf41   :  { %v1640_v63 = vadd.f32 %v1637_v59, %v2759_v43  ;;  %v1771_v1 = vadd.f32 %v1768_v60, %v1747_v61 }
 0xf43   :  { %v1644_v52 = vsel %vm121_vm2, %v1640_v63, 0.0 }
 0xf44   :  { %1645 = vadd.xlane.f32.xlu2 %v1644_v52 }
 0xf46   :  { %v1792_v56 = vpop.f32.mrf.mxu0  ;;  %v1840_v3 = vpop.f32.mrf.mxu2 }
 0xf47   :  { %v1795_v49 = vadd.f32 %v1792_v56, %v1771_v1  ;;  %v1864_v27 = vpop.f32.mrf.mxu3 }
 0xf48   :  { %v1816_v0 = vpop.f32.mrf.mxu1 }
 0xf49   :  { %v1819_v47 = vadd.f32 %v1816_v0, %v1795_v49 }
 0xf4b   :  { %v1843_v4 = vadd.f32 %v1840_v3, %v1819_v47 }
 0xf4d   :  { %v1867_v6 = vadd.f32 %v1864_v27, %v1843_v4 }
 0xf4e   :  { %v1888_v8 = vpop.f32.mrf.mxu0 }
 0xf4f   :  { %v1891_v45 = vadd.f32 %v1888_v8, %v1867_v6 }
 0xf50   :  { %v1912_v11 = vpop.f32.mrf.mxu1 }
 0xf51   :  { %v1915_v23 = vadd.f32 %v1912_v11, %v1891_v45 }
 0xf53   :  { %1917 = vst.msk [vmem:[#allocation5] sm:$0x1] %vm1916_vm13, %v1915_v23 }
 0xfb7   :  { %v1646_v43 = vpop.xlane.xlu2 %1645 }
 0xfb8   :  { %v1648_v10 = vmul.f32 %v1646_v43, %v2512_v30 }
 0xfba   :  { %v1650_v13 = vsub.f32 %v1640_v63, %v1648_v10 }
 0xfbc   :  { %v1652_v42 = vmul.f32 %v1650_v13, %v1650_v13 }
 0xfbe   :  { %v1656_v14 = vsel %vm121_vm2, %v1652_v42, 0.0 }
 0xfbf   :  { %1657 = vadd.xlane.f32.xlu1 %v1656_v14 }
0x1032   :  { %v1658_v15 = vpop.xlane.xlu1 %1657 }
0x1033   :  { %v1660_v39 = vmul.f32 %v1658_v15, %v2512_v30 }
0x1035   :  { %v1662_v16 = vadd.f32 1e-05, %v1660_v39 }
0x1037   :  { %2325 = vrsqrt.f32 %v1662_v16  ;;  %vm1679_vm14 = vweird.f32 %v1662_v16 }
0x103d   :  { %v2326_v17 = vpop.eup %2325 }
0x103e   :  { %v1674_v62 = vmul.f32 %v2326_v17, %v1662_v16  ;;  %vm1680_vm1 = vweird.f32 %v2326_v17 }
0x103f   :  { %vm1681_vm15 = vmor %vm1679_vm14, %vm1680_vm1 }
0x1040   :  { %v1675_v18 = vmul.f32 %v2326_v17, %v1674_v62 }
0x1042   :  { %v1676_v5 = vmul.f32 0.5, %v1675_v18 }
0x1044   :  { %v1677_v21 = vsub.f32 1.5, %v1676_v5 }
0x1046   :  { %v1678_v19 = vmul.f32 %v2326_v17, %v1677_v21 }
0x1048   :  { %v1682_v2 = vsel %vm1681_vm15, %v2326_v17, %v1678_v19 }
0x1049   :  { %v1684_v7 = vmul.f32 %v1682_v2, %v1650_v13 }
0x104b   :  { %v1687_v57 = vmul.f32 %v2819_v24, %v1684_v7 }
0x104d   :  { %v1690_v25 = vadd.f32 %v2821_v28, %v1687_v57 }
0x104f   :  { %2224 = vmatmul.msk.f32.vlgmr.msra.gmra.mxu2 %vm121_vm2, %v1690_v25  ;;  %v1942_v30 = vrot.slane %v1690_v25, 1  ;;  %v1966_v12 = vrot.slane %v1690_v25, 2  ;;  %v1990_v22 = vrot.slane %v1690_v25, 3  ;;  %v2014_v9 = vrot.slane %v1690_v25, 4 }
0x1050   :  { %v2038_v29 = vrot.slane %v1690_v25, 5  ;;  %v2062_v20 = vrot.slane %v1690_v25, 6  ;;  %v2086_v33 = vrot.slane %v1690_v25, 7 }
0x1051   :  { %2225 = vmatmul.msk.f32.vlgmr.msra.gmra.mxu3 %vm121_vm2, %v1942_v30  ;;  %2226 = vmatmul.msk.f32.vlgmr.msra.gmra.mxu0 %vm121_vm2, %v1966_v12 }
0x1052   :  { %2227 = vmatmul.msk.f32.vlgmr.msrb.gmra.mxu1 %vm121_vm2, %v1990_v22 }
0x1057   :  { %2228 = vmatmul.msk.f32.vlgmr.msrb.gmra.mxu2 %vm121_vm2, %v2014_v9 }
0x1059   :  { %2229 = vmatmul.msk.f32.vlgmr.msrb.gmra.mxu3 %vm121_vm2, %v2038_v29  ;;  %2230 = vmatmul.msk.f32.vlgmr.msrb.gmra.mxu0 %vm121_vm2, %v2062_v20 }
0x105a   :  { %2231 = vmatmul.msk.f32.vlgmr.msra.gmra.mxu1 %vm121_vm2, %v2086_v33 }
0x10ce   :  { %v1986_v32 = vpop.f32.mrf.mxu0 }
0x10cf   :  { %v2010_v34 = vpop.f32.mrf.mxu1 }
0x10d2   :  { %v1938_v24 = vpop.f32.mrf.mxu2 }
0x10d3   :  { %v1941_v28 = vadd.f32 %v1938_v24, %v1723_v55 }
0x10d4   :  { %v1962_v31 = vpop.f32.mrf.mxu3 }
0x10d5   :  { %v1965_v40 = vadd.f32 %v1962_v31, %v1941_v28 }
0x10d6   :  { %v2082_v41 = vpop.f32.mrf.mxu0 }
0x10d7   :  { %v1989_v44 = vadd.f32 %v1986_v32, %v1965_v40  ;;  %v2106_v48 = vpop.f32.mrf.mxu1 }
0x10d9   :  { %v2013_v35 = vadd.f32 %v2010_v34, %v1989_v44 }
0x10da   :  { %v2034_v36 = vpop.f32.mrf.mxu2 }
0x10db   :  { %v2037_v37 = vadd.f32 %v2034_v36, %v2013_v35 }
0x10dc   :  { %v2058_v26 = vpop.f32.mrf.mxu3 }
0x10dd   :  { %v2061_v38 = vadd.f32 %v2058_v26, %v2037_v37 }
0x10df   :  { %v2085_v46 = vadd.f32 %v2082_v41, %v2061_v38 }
0x10e1   :  { %v2109_v50 = vadd.f32 %v2106_v48, %v2085_v46 }
0x10e3   :  { %2110 = vst.msk [vmem:[#allocation5 + $0x1] sm:$0x1] %vm1916_vm13, %v2109_v50 }
0x10e4   :  { %2121 = dma.vmem_to_hbm [thread:$0]  %s2117_s23, 32, %s2119_s26, [#allocation4]  }
0x10e5   :  { %2377 = dma.done.wait [#allocation4], 32  }
0x10e6   :  { %2378 = vsyncadd [#allocation4], 4294967264 }
0x10e7   :  { %2126 = vsyncpa [#allocation3], 1 }
0x10e8   :  { %2127 = vsyncpa [#allocation4], 1 }

</bundles_post_ra>
